<compile_context>
chip_gen: v6e
topology: v6e:2x2x1
jax: 0.10.0
libtpu: 0.0.40
codegen_flags: <defaults>
</compile_context>

<pallas_src>
import functools

import jax
import jax.numpy as jnp
from jax.experimental import pallas as pl
from jax.experimental.pallas import tpu as pltpu


# ----------------------------- small helpers ------------------------------- #

def _round_up(x, m):
    return ((x + m - 1) // m) * m


def _pad_to(arr, shape):
    pads = [(0, s - d) for d, s in zip(arr.shape, shape)]
    return jnp.pad(arr, pads)


def _vmem_limit_bytes():
    """Per-generation VMEM limit: ~3/4 of physical, capped at 100 MiB.

    v7x (64 MiB physical) -> 48 MiB; v5e/v6e (128 MiB physical) -> 96 MiB.
    Falls back to the conservative v7x value if the query is unavailable."""
    try:
        phys = int(pltpu.get_tpu_info().vmem_capacity_bytes)
    except Exception:
        phys = 64 * 1024 * 1024
    return min((phys * 3) // 4, 100 * 1024 * 1024)


# ----------------------------- Pallas kernels ------------------------------ #

def _gcn_resident_kernel(a_ref, x0_ref, w_ref, b_ref, g_ref, beta_ref,
                         mpw_ref, mpb_ref,
                         relu_ref, emb_ref, logp_ref, act_ref, *, true_h):
    """All GCN layers fused in one call; grid = (num_layers_total,).

    A_norm and X0 are VMEM-resident (constant index maps), per-layer params are
    indexed by the layer grid axis, and the LayerNorm activation is carried
    across layers in the `act_ref` VMEM scratch.  The last layer's epilogue also
    applies the collapsed post_mp affine map + log_softmax."""
    l = pl.program_id(0)
    last = pl.num_programs(0) - 1

    @pl.when(l == 0)
    def _():
        act_ref[...] = x0_ref[...].astype(jnp.float32)
        emb_ref[...] = jnp.zeros_like(emb_ref)
        logp_ref[...] = jnp.zeros_like(logp_ref)

    # Z = act @ W_l   (GCNConv applies the weight before aggregation); bf16 MXU.
    z = jnp.dot(act_ref[...].astype(jnp.bfloat16), w_ref[0],
                preferred_element_type=jnp.float32)
    # conv = A_norm @ Z + b   (bias added AFTER aggregation, matching GCNConv).
    conv = jnp.dot(a_ref[...], z.astype(jnp.bfloat16),
                   preferred_element_type=jnp.float32) + b_ref[0]
    r = jnp.maximum(conv, 0.0)
    relu_ref[0] = r                                   # embeddings list entry
    mean = jnp.mean(r, axis=-1, keepdims=True)
    var = jnp.mean((r - mean) * (r - mean), axis=-1, keepdims=True)
    ln = (r - mean) * jax.lax.rsqrt(var + 1e-5) * g_ref[0] + beta_ref[0]

    # Carry the LayerNorm output to the next layer entirely in VMEM.
    if true_h == act_ref.shape[1]:
        act_ref[...] = ln
    else:
        act_ref[:, 0:true_h] = ln

    @pl.when(l == last)
    def _():
        emb_ref[...] = conv                           # emb = last conv, pre-ReLU
        # Collapsed post_mp (single affine map) + fused log_softmax(dim=1).
        logits = jnp.dot(ln.astype(jnp.bfloat16), mpw_ref[...],
                         preferred_element_type=jnp.float32) + mpb_ref[...]
        m = jnp.max(logits, axis=-1, keepdims=True)
        s = logits - m
        lse = jnp.log(jnp.sum(jnp.exp(s), axis=-1, keepdims=True))
        logp_ref[...] = s - lse


def _gcn_stream_layer_kernel(a_ref, z_ref, b_ref, g_ref, beta_ref, *refs,
                             emit_conv):
    """Streaming fallback: tiled A @ Z accumulation + (bias, ReLU, LN) epilogue.

    Z = X @ W is pre-computed (reassociation), so there is no epilogue matmul.
    grid = (row tiles of A, K-reduction).  conv is only emitted for the final
    conv layer (the only one whose pre-ReLU output is consumed as `emb`)."""
    acc_ref = refs[-1]
    k = pl.program_id(1)

    @pl.when(k == 0)
    def _():
        acc_ref[...] = jnp.zeros_like(acc_ref)

    acc_ref[...] += jnp.dot(a_ref[...], z_ref[...],
                            preferred_element_type=jnp.float32)

    @pl.when(k == pl.num_programs(1) - 1)
    def _():
        conv = acc_ref[...] + b_ref[...]
        if emit_conv:
            refs[0][...] = conv
        relu_ref = refs[1] if emit_conv else refs[0]
        ln_ref = refs[2] if emit_conv else refs[1]
        r = jnp.maximum(conv, 0.0)
        relu_ref[...] = r
        mean = jnp.mean(r, axis=-1, keepdims=True)
        var = jnp.mean((r - mean) * (r - mean), axis=-1, keepdims=True)
        ln_ref[...] = (r - mean) * jax.lax.rsqrt(var + 1e-5) * g_ref[...] + beta_ref[...]


def _post_mp_logsoftmax_kernel(x_ref, w_ref, b_ref, o_ref):
    """Collapsed post_mp (single affine map) + fused log_softmax(dim=1)."""
    logits = jnp.dot(x_ref[...].astype(jnp.bfloat16), w_ref[...],
                     preferred_element_type=jnp.float32) + b_ref[...]
    m = jnp.max(logits, axis=-1, keepdims=True)
    s = logits - m
    lse = jnp.log(jnp.sum(jnp.exp(s), axis=-1, keepdims=True))
    o_ref[...] = s - lse


# ---------------------------- pallas_call wrappers -------------------------- #

def gcn_forward_resident(a_bf, x0_bf, w_all, b_all, g_all, beta_all,
                         mp_w_bf, mp_b, vmem_limit):
    """One pallas_call for the whole network (A_norm VMEM-resident)."""
    n_pad, k_in = x0_bf.shape
    l_tot, _, h = w_all.shape
    out_dim = mp_w_bf.shape[1]

    flops = l_tot * (2 * n_pad * k_in * h + 2 * n_pad * n_pad * h) \
        + 2 * n_pad * h * out_dim
    bytes_accessed = (a_bf.size * 2 + x0_bf.size * 2 + w_all.size * 2
                      + (b_all.size + g_all.size + beta_all.size) * 4
                      + mp_w_bf.size * 2 + mp_b.size * 4
                      + (l_tot * n_pad * h + n_pad * h + n_pad * out_dim) * 4)

    kernel = functools.partial(_gcn_resident_kernel, true_h=h)
    return pl.pallas_call(
        kernel,
        out_shape=(
            jax.ShapeDtypeStruct((l_tot, n_pad, h), jnp.float32),  # per-layer ReLU
            jax.ShapeDtypeStruct((n_pad, h), jnp.float32),          # emb (last conv)
            jax.ShapeDtypeStruct((n_pad, out_dim), jnp.float32),    # log_probs
        ),
        grid_spec=pltpu.PrefetchScalarGridSpec(
            num_scalar_prefetch=0,
            grid=(l_tot,),
            in_specs=[
                pl.BlockSpec((n_pad, n_pad), lambda l: (0, 0)),    # A (resident)
                pl.BlockSpec((n_pad, k_in), lambda l: (0, 0)),     # X0 (resident)
                pl.BlockSpec((1, k_in, h), lambda l: (l, 0, 0)),   # W_l
                pl.BlockSpec((1, 1, h), lambda l: (l, 0, 0)),      # bias_l
                pl.BlockSpec((1, 1, h), lambda l: (l, 0, 0)),      # LN gamma_l
                pl.BlockSpec((1, 1, h), lambda l: (l, 0, 0)),      # LN beta_l
                pl.BlockSpec((h, out_dim), lambda l: (0, 0)),      # collapsed post_mp W
                pl.BlockSpec((1, out_dim), lambda l: (0, 0)),      # collapsed post_mp b
            ],
            out_specs=(
                pl.BlockSpec((1, n_pad, h), lambda l: (l, 0, 0)),
                pl.BlockSpec((n_pad, h), lambda l: (0, 0)),        # written once (last l)
                pl.BlockSpec((n_pad, out_dim), lambda l: (0, 0)),  # written once (last l)
            ),
            scratch_shapes=[pltpu.VMEM((n_pad, k_in), jnp.float32)],  # carried activation
        ),
        compiler_params=pltpu.CompilerParams(
            dimension_semantics=("arbitrary",),        # layers are sequential
            vmem_limit_bytes=vmem_limit,
        ),
        cost_estimate=pl.CostEstimate(
            flops=flops,
            transcendentals=l_tot * n_pad + n_pad * out_dim,
            bytes_accessed=bytes_accessed),
    )(a_bf, x0_bf, w_all, b_all, g_all, beta_all, mp_w_bf, mp_b)


def gcn_stream_layer(a_bf, z_bf, b, g, beta, tm, tk, emit_conv, vmem_limit):
    """Streaming fallback for one layer: A is re-streamed from HBM with big tiles."""
    n_pad = a_bf.shape[0]
    h = z_bf.shape[1]
    out_shapes = []
    if emit_conv:
        out_shapes.append(jax.ShapeDtypeStruct((n_pad, h), jnp.float32))
    out_shapes += [jax.ShapeDtypeStruct((n_pad, h), jnp.float32),
                   jax.ShapeDtypeStruct((n_pad, h), jnp.float32)]
    out_specs = tuple(pl.BlockSpec((tm, h), lambda i, k: (i, 0)) for _ in out_shapes)

    kernel = functools.partial(_gcn_stream_layer_kernel, emit_conv=emit_conv)
    res = pl.pallas_call(
        kernel,
        out_shape=tuple(out_shapes),
        grid_spec=pltpu.PrefetchScalarGridSpec(
            num_scalar_prefetch=0,
            grid=(n_pad // tm, n_pad // tk),
            in_specs=[
                pl.BlockSpec((tm, tk), lambda i, k: (i, k)),   # A tile
                pl.BlockSpec((tk, h), lambda i, k: (k, 0)),    # Z tile
                pl.BlockSpec((1, h), lambda i, k: (0, 0)),     # bias
                pl.BlockSpec((1, h), lambda i, k: (0, 0)),     # LN gamma
                pl.BlockSpec((1, h), lambda i, k: (0, 0)),     # LN beta
            ],
            out_specs=out_specs,
            scratch_shapes=[pltpu.VMEM((tm, h), jnp.float32)],
        ),
        compiler_params=pltpu.CompilerParams(
            dimension_semantics=("parallel", "arbitrary"),     # >=2 row tiles for v7x
            vmem_limit_bytes=vmem_limit,
        ),
        cost_estimate=pl.CostEstimate(
            flops=2 * n_pad * n_pad * h,
            transcendentals=n_pad,
            bytes_accessed=a_bf.size * 2 + z_bf.size * 2
            + len(out_shapes) * n_pad * h * 4),
    )(a_bf, z_bf, b, g, beta)

    if emit_conv:
        conv, relu, ln = res
    else:
        conv = None
        relu, ln = res
    return conv, relu, ln


def post_mp_head(x, w_bf, b, tm, vmem_limit):
    """Row-tiled collapsed post_mp + log_softmax (streaming path only)."""
    n_pad, h = x.shape
    out_dim = w_bf.shape[1]
    return pl.pallas_call(
        _post_mp_logsoftmax_kernel,
        out_shape=jax.ShapeDtypeStruct((n_pad, out_dim), jnp.float32),
        grid_spec=pltpu.PrefetchScalarGridSpec(
            num_scalar_prefetch=0,
            grid=(n_pad // tm,),
            in_specs=[
                pl.BlockSpec((tm, h), lambda i: (i, 0)),
                pl.BlockSpec((h, out_dim), lambda i: (0, 0)),
                pl.BlockSpec((1, out_dim), lambda i: (0, 0)),
            ],
            out_specs=pl.BlockSpec((tm, out_dim), lambda i: (i, 0)),
        ),
        compiler_params=pltpu.CompilerParams(
            dimension_semantics=("parallel",),
            vmem_limit_bytes=vmem_limit,
        ),
        cost_estimate=pl.CostEstimate(
            flops=2 * n_pad * h * out_dim,
            transcendentals=n_pad * out_dim,
            bytes_accessed=(n_pad * h + n_pad * out_dim) * 4 + h * out_dim * 2),
    )(x, w_bf, b)


# ------------------------------- JAX glue ---------------------------------- #

def build_gcn_adjacency(edge_index, num_nodes):
    """Dense GCN-normalized adjacency: D^{-1/2} (A + I) D^{-1/2}.
    edge_index: int32 [2, E]; messages flow source -> target (row = target)."""
    src, dst = edge_index[0], edge_index[1]
    a = jnp.zeros((num_nodes, num_nodes), jnp.float32)
    a = a.at[dst, src].set(1.0)
    eye = jnp.eye(num_nodes, dtype=jnp.float32)
    a = a * (1.0 - eye) + eye          # force self-loops to exactly 1 (no double count)
    deg = jnp.sum(a, axis=1)
    dinv = jnp.where(deg > 0, 1.0 / jnp.sqrt(deg), 0.0)
    return dinv[:, None] * a * dinv[None, :]


class GNNPallas:
    """JAX/Pallas port of GNN(input_dim, hidden_dim, dense_hidden_dim, output_dim,
    dropout, num_layers, gnn_type='GCNConv', heads=1, task='node')."""

    def __init__(self, input_dim, hidden_dim, dense_hidden_dim, output_dim,
                 dropout, num_layers, heads=1, task='node', key=None):
        assert task == 'node'
        assert heads == 1                       # GCNConv ignores heads
        self.task = task
        self.heads = heads
        self.num_layers = num_layers
        self.dropout = dropout                  # identity at inference
        self.input_dim = input_dim
        H = hidden_dim * heads
        self.hidden = H
        self.output_dim = output_dim

        key = jax.random.PRNGKey(0) if key is None else key
        ks = iter(jax.random.split(key, 2 * (num_layers + 4) + 2))

        def lin(kin, kout):
            w = jax.random.normal(next(ks), (kin, kout), jnp.float32) * (1.0 / jnp.sqrt(kin))
            b = jax.random.normal(next(ks), (1, kout), jnp.float32) * 0.01
            return w, b

        # conv1 + norm1
        self.conv1_w, self.conv1_b = lin(input_dim, H)
        self.norm1_g = jnp.ones((1, H), jnp.float32)
        self.norm1_b = jnp.zeros((1, H), jnp.float32)
        # hidden convs + layer norms
        self.convs, self.lns = [], []
        for _ in range(num_layers):
            self.convs.append(lin(H, H))
            self.lns.append((jnp.ones((1, H), jnp.float32), jnp.zeros((1, H), jnp.float32)))
        # post_mp: Linear(H, D) -> Linear(D, D//2) -> Linear(D//2, output_dim).
        # No nonlinearities between them -> collapse to one affine map.
        D = dense_hidden_dim
        self.mp1_w, self.mp1_b = lin(H, D)
        self.mp2_w, self.mp2_b = lin(D, D // 2)
        self.mp3_w, self.mp3_b = lin(D // 2, output_dim)
        self.mp_w = self.mp1_w @ self.mp2_w @ self.mp3_w
        self.mp_b = (self.mp1_b @ self.mp2_w + self.mp2_b) @ self.mp3_w + self.mp3_b
        self.mp_w_bf = self.mp_w.astype(jnp.bfloat16)

        # Stacked / zero-padded per-layer params for the resident-A fused kernel.
        # Layer 0's [F_in, H] weight is padded to [K_in, H]; padded rows are zero
        # so padded/stale input columns never contribute.
        self.k_in = max(H, _round_up(input_dim, 8))
        w0 = jnp.zeros((self.k_in, H), jnp.float32).at[:input_dim, :].set(self.conv1_w)
        w_stack = [w0] + [_pad_to(w, (self.k_in, H)) for (w, _) in self.convs]
        self.w_all = jnp.stack(w_stack).astype(jnp.bfloat16)               # [L, K_in, H]
        self.b_all = jnp.stack([self.conv1_b] + [b for (_, b) in self.convs])
        self.g_all = jnp.stack([self.norm1_g] + [g for (g, _) in self.lns])
        self.beta_all = jnp.stack([self.norm1_b] + [bb for (_, bb) in self.lns])

        self.embeddings = []

    def forward(self, x, edge_index, force_streaming=False):
        n = x.shape[0]
        H = self.hidden
        l_tot = self.num_layers + 1
        out_dim = self.output_dim
        vmem_limit = _vmem_limit_bytes()

        a_norm = build_gcn_adjacency(edge_index, n)
        self.embeddings.append(x)      # mirrors self.embeddings.append(x.detach()...)

        # Resident path iff double-buffered bf16 A + activations fit the per-gen limit.
        n_pad_res = max(128, _round_up(n, 128))
        resident_bytes = (2 * n_pad_res * n_pad_res * 2        # A (double-buffered)
                          + 2 * n_pad_res * self.k_in * 2      # X0
                          + n_pad_res * self.k_in * 4          # act scratch
                          + 3 * n_pad_res * H * 4              # relu block x2 + emb
                          + n_pad_res * out_dim * 4
                          + (2 << 20))                          # params / internal slack
        use_resident = (not force_streaming) and resident_bytes <= vmem_limit

        if use_resident:
            n_pad = n_pad_res
            a_bf = _pad_to(a_norm, (n_pad, n_pad)).astype(jnp.bfloat16)
            x0_bf = _pad_to(x, (n_pad, self.k_in)).astype(jnp.bfloat16)
            relu_all, emb, log_probs = gcn_forward_resident(
                a_bf, x0_bf, self.w_all, self.b_all, self.g_all, self.beta_all,
                self.mp_w_bf, self.mp_b, vmem_limit)
            for l in range(l_tot):
                self.embeddings.append(relu_all[l, :n])
            return emb[:n], self.embeddings, log_probs[:n]

        # --- Streaming fallback: per-layer A stream with large tiles. ---
        n_pad = _round_up(max(n, 1024), 1024)
        tm, tk = 512, 1024                      # n_pad//tm >= 2 row tiles (v7x megacore)
        a_bf = _pad_to(a_norm, (n_pad, n_pad)).astype(jnp.bfloat16)
        act = _pad_to(x, (n_pad, x.shape[1]))
        layer_params = [(self.conv1_w, self.conv1_b, self.norm1_g, self.norm1_b)] + \
            [(w, b, g, beta) for (w, b), (g, beta) in zip(self.convs, self.lns)]

        conv = None
        ln = None
        for l, (w, b, g, beta) in enumerate(layer_params):
            # Reassociated: Z = act @ W (tiny), then stream A against Z.
            z = jnp.dot(act.astype(jnp.bfloat16), w.astype(jnp.bfloat16),
                        preferred_element_type=jnp.float32).astype(jnp.bfloat16)
            conv, relu, ln = gcn_stream_layer(
                a_bf, z, b, g, beta, tm, tk,
                emit_conv=(l == l_tot - 1), vmem_limit=vmem_limit)
            self.embeddings.append(relu[:n])
            act = ln
        log_probs = post_mp_head(ln, self.mp_w_bf, self.mp_b, tm, vmem_limit)
        return conv[:n], self.embeddings, log_probs[:n]


# ------------------------- pure-JAX reference (checks) ---------------------- #

def reference_forward(model, x, edge_index):
    """Unpadded pure-JAX forward mirroring the kernels' bf16 MXU casts and the
    A @ (X @ W) + b association."""
    a_bf = build_gcn_adjacency(edge_index, x.shape[0]).astype(jnp.bfloat16)

    def layer(act, w, b, g, beta):
        z = jnp.dot(act.astype(jnp.bfloat16), w.astype(jnp.bfloat16),
                    preferred_element_type=jnp.float32)
        conv = jnp.dot(a_bf, z.astype(jnp.bfloat16),
                       preferred_element_type=jnp.float32) + b
        r = jnp.maximum(conv, 0.0)
        mean = r.mean(-1, keepdims=True)
        var = ((r - mean) ** 2).mean(-1, keepdims=True)
        ln = (r - mean) * jax.lax.rsqrt(var + 1e-5) * g + beta
        return conv, r, ln

    relus = []
    conv, r, ln = layer(x, model.conv1_w, model.conv1_b, model.norm1_g, model.norm1_b)
    relus.append(r)
    for (w, b), (g, beta) in zip(model.convs, model.lns):
        conv, r, ln = layer(ln, w, b, g, beta)
        relus.append(r)
    logits = jnp.dot(ln.astype(jnp.bfloat16), model.mp_w.astype(jnp.bfloat16),
                     preferred_element_type=jnp.float32) + model.mp_b
    return conv, relus, jax.nn.log_softmax(logits, axis=1)


# --------------------------------- main ------------------------------------ #

if __name__ == "__main__":
    key = jax.random.PRNGKey(0)
    k_x, k_p, k_x2 = jax.random.split(key, 3)

    # Small synthetic graph: 16 nodes, undirected ring.
    N, INPUT_DIM = 16, 8
    HIDDEN, DENSE_HIDDEN, OUT_DIM, NUM_LAYERS = 32, 16, 4, 2

    x = jax.random.normal(k_x, (N, INPUT_DIM), jnp.float32)
    src = jnp.arange(N, dtype=jnp.int32)
    dst = (src + 1) % N
    edge_index = jnp.stack([jnp.concatenate([src, dst]),
                            jnp.concatenate([dst, src])], axis=0)   # [2, 2N]

    model = GNNPallas(INPUT_DIM, HIDDEN, DENSE_HIDDEN, OUT_DIM,
                      dropout=0.5, num_layers=NUM_LAYERS, heads=1, task='node', key=k_p)

    emb, embeddings, log_probs = model.forward(x, edge_index)
    jax.block_until_ready((emb, log_probs))

    assert emb.shape == (N, HIDDEN)
    assert log_probs.shape == (N, OUT_DIM)
    assert len(embeddings) == NUM_LAYERS + 2
    assert bool(jnp.allclose(jnp.sum(jnp.exp(log_probs), axis=1), 1.0, atol=1e-4))

    ref_emb, ref_relus, ref_logp = reference_forward(model, x, edge_index)
    assert bool(jnp.allclose(emb, ref_emb, atol=2e-2, rtol=2e-2))
    assert bool(jnp.allclose(log_probs, ref_logp, atol=2e-2, rtol=2e-2))
    for e_k, e_r in zip(embeddings[1:], ref_relus):
        assert bool(jnp.allclose(e_k, e_r, atol=2e-2, rtol=2e-2))

    # Larger ring graph: resident path at N_pad=640 (multi-layer grid, A resident).
    N2 = 600
    x2 = jax.random.normal(k_x2, (N2, INPUT_DIM), jnp.float32)
    src2 = jnp.arange(N2, dtype=jnp.int32)
    dst2 = (src2 + 1) % N2
    ei2 = jnp.stack([jnp.concatenate([src2, dst2]),
                     jnp.concatenate([dst2, src2])], axis=0)
    emb2, _, logp2 = model.forward(x2, ei2)
    jax.block_until_ready((emb2, logp2))
    assert logp2.shape == (N2, OUT_DIM)
    ref_emb2, _, ref_logp2 = reference_forward(model, x2, ei2)
    assert bool(jnp.allclose(emb2, ref_emb2, atol=2e-2, rtol=2e-2))
    assert bool(jnp.allclose(logp2, ref_logp2, atol=2e-2, rtol=2e-2))

    # Force the streaming fallback (per-layer A stream, 512x1024 tiles, 2 row
    # tiles -> "parallel" row axis for v7x) on the same graph to validate it too.
    emb3, _, logp3 = model.forward(x2, ei2, force_streaming=True)
    jax.block_until_ready((emb3, logp3))
    assert bool(jnp.allclose(emb3, ref_emb2, atol=2e-2, rtol=2e-2))
    assert bool(jnp.allclose(logp3, ref_logp2, atol=2e-2, rtol=2e-2))

    print("KERNEL_OK")
</pallas_src>

<mosaic_0001>
module attributes {stable_mosaic.version = 11 : i64} {
  func.func @_gcn_resident_kernel(%arg0: i32, %arg1: memref<128x128xbf16, #tpu.memory_space<vmem>>, %arg2: memref<128x32xbf16, #tpu.memory_space<vmem>>, %arg3: memref<1x32x32xbf16, #tpu.memory_space<vmem>>, %arg4: memref<1x1x32xf32, #tpu.memory_space<vmem>>, %arg5: memref<1x1x32xf32, #tpu.memory_space<vmem>>, %arg6: memref<1x1x32xf32, #tpu.memory_space<vmem>>, %arg7: memref<32x4xbf16, #tpu.memory_space<vmem>>, %arg8: memref<1x4xf32, #tpu.memory_space<vmem>>, %arg9: memref<1x128x32xf32, #tpu.memory_space<vmem>>, %arg10: memref<128x32xf32, #tpu.memory_space<vmem>>, %arg11: memref<128x4xf32, #tpu.memory_space<vmem>>, %arg12: memref<128x32xf32, #tpu.memory_space<vmem>>) attributes {dimension_semantics = [#tpu.dimension_semantics<arbitrary>], iteration_bounds = array<i64: 3>, scalar_prefetch = 0 : i64, scratch_operands = 1 : i64, tpu.core_type = #tpu.core_type<tc>, window_params = [{pipeline_mode = #tpu.pipeline_mode<synchronous>, transform_indices = @transform_0, window_bounds = array<i64: 128, 128>}, {pipeline_mode = #tpu.pipeline_mode<synchronous>, transform_indices = @transform_1, window_bounds = array<i64: 128, 32>}, {transform_indices = @transform_2, window_bounds = array<i64: 1, 32, 32>}, {transform_indices = @transform_3, window_bounds = array<i64: 1, 1, 32>}, {transform_indices = @transform_4, window_bounds = array<i64: 1, 1, 32>}, {transform_indices = @transform_5, window_bounds = array<i64: 1, 1, 32>}, {pipeline_mode = #tpu.pipeline_mode<synchronous>, transform_indices = @transform_6, window_bounds = array<i64: 32, 4>}, {pipeline_mode = #tpu.pipeline_mode<synchronous>, transform_indices = @transform_7, window_bounds = array<i64: 1, 4>}, {transform_indices = @transform_8, window_bounds = array<i64: 1, 128, 32>}, {pipeline_mode = #tpu.pipeline_mode<synchronous>, transform_indices = @transform_9, window_bounds = array<i64: 128, 32>}, {pipeline_mode = #tpu.pipeline_mode<synchronous>, transform_indices = @transform_10, window_bounds = array<i64: 128, 4>}]} {
    %c0_i32 = arith.constant 0 : i32
    %0 = arith.cmpi eq, %arg0, %c0_i32 : i32
    %1 = arith.extui %0 : i1 to i32
    %c0_i32_0 = arith.constant 0 : i32
    %2 = arith.cmpi ne, %1, %c0_i32_0 : i32
    scf.if %2 {
      %c0_29 = arith.constant 0 : index
      %c0_30 = arith.constant 0 : index
      %52 = vector.load %arg2[%c0_29, %c0_30] : memref<128x32xbf16, #tpu.memory_space<vmem>>, vector<128x32xbf16>
      %53 = arith.extf %52 : vector<128x32xbf16> to vector<128x32xf32>
      %c0_31 = arith.constant 0 : index
      %c0_32 = arith.constant 0 : index
      %54 = vector.load %arg12[%c0_31, %c0_32] : memref<128x32xf32, #tpu.memory_space<vmem>>, vector<128x32xf32>
      tpu.vector_store %arg12[%c0_31, %c0_32], %53 {strides = array<i32>} : memref<128x32xf32, #tpu.memory_space<vmem>>, vector<128x32xf32>,
      %cst_33 = arith.constant 0.000000e+00 : f32
      %55 = vector.broadcast %cst_33 : f32 to vector<128x32xf32>
      %c0_34 = arith.constant 0 : index
      %c0_35 = arith.constant 0 : index
      %56 = vector.load %arg10[%c0_34, %c0_35] : memref<128x32xf32, #tpu.memory_space<vmem>>, vector<128x32xf32>
      tpu.vector_store %arg10[%c0_34, %c0_35], %55 {strides = array<i32>} : memref<128x32xf32, #tpu.memory_space<vmem>>, vector<128x32xf32>,
      %cst_36 = arith.constant 0.000000e+00 : f32
      %57 = vector.broadcast %cst_36 : f32 to vector<128x4xf32>
      %c0_37 = arith.constant 0 : index
      %c0_38 = arith.constant 0 : index
      %58 = vector.load %arg11[%c0_37, %c0_38] : memref<128x4xf32, #tpu.memory_space<vmem>>, vector<128x4xf32>
      tpu.vector_store %arg11[%c0_37, %c0_38], %57 {strides = array<i32>} : memref<128x4xf32, #tpu.memory_space<vmem>>, vector<128x4xf32>,
    } else {
    }
    %c0 = arith.constant 0 : index
    %c0_1 = arith.constant 0 : index
    %3 = vector.load %arg12[%c0, %c0_1] : memref<128x32xf32, #tpu.memory_space<vmem>>, vector<128x32xf32>
    %4 = arith.truncf %3 : vector<128x32xf32> to vector<128x32xbf16>
    %c0_2 = arith.constant 0 : index
    %c0_3 = arith.constant 0 : index
    %c0_4 = arith.constant 0 : index
    %5 = vector.load %arg3[%c0_2, %c0_3, %c0_4] : memref<1x32x32xbf16, #tpu.memory_space<vmem>>, vector<1x32x32xbf16>
    %6 = vector.shape_cast %5 : vector<1x32x32xbf16> to vector<32x32xbf16>
    %cst = arith.constant dense<0.000000e+00> : vector<128x32xf32>
    %7 = tpu.matmul %4, %6, %cst {dimension_numbers = #tpu.dot_dimension_numbers<[1], [0], [0], [1], [0, 0, 1, 1], [], []>} : vector<128x32xbf16>, vector<32x32xbf16>, vector<128x32xf32> -> vector<128x32xf32>
    %c0_5 = arith.constant 0 : index
    %c0_6 = arith.constant 0 : index
    %8 = vector.load %arg1[%c0_5, %c0_6] : memref<128x128xbf16, #tpu.memory_space<vmem>>, vector<128x128xbf16>
    %9 = arith.truncf %7 : vector<128x32xf32> to vector<128x32xbf16>
    %cst_7 = arith.constant dense<0.000000e+00> : vector<128x32xf32>
    %10 = tpu.matmul %8, %9, %cst_7 {dimension_numbers = #tpu.dot_dimension_numbers<[1], [0], [0], [1], [0, 0, 1, 1], [], []>} : vector<128x128xbf16>, vector<128x32xbf16>, vector<128x32xf32> -> vector<128x32xf32>
    %c0_8 = arith.constant 0 : index
    %c0_9 = arith.constant 0 : index
    %c0_10 = arith.constant 0 : index
    %11 = vector.load %arg4[%c0_8, %c0_9, %c0_10] : memref<1x1x32xf32, #tpu.memory_space<vmem>>, vector<1x1x32xf32>
    %12 = vector.shape_cast %11 : vector<1x1x32xf32> to vector<1x32xf32>
    %13 = vector.broadcast %12 : vector<1x32xf32> to vector<128x32xf32>
    %14 = arith.addf %10, %13 : vector<128x32xf32>
    %cst_11 = arith.constant 0.000000e+00 : f32
    %15 = vector.broadcast %cst_11 : f32 to vector<128x32xf32>
    %16 = arith.maximumf %14, %15 : vector<128x32xf32>
    %c0_12 = arith.constant 0 : index
    %c0_13 = arith.constant 0 : index
    %c0_14 = arith.constant 0 : index
    %17 = vector.load %arg9[%c0_12, %c0_13, %c0_14] : memref<1x128x32xf32, #tpu.memory_space<vmem>>, vector<1x128x32xf32>
    %18 = vector.shape_cast %17 : vector<1x128x32xf32> to vector<128x32xf32>
    %19 = vector.shape_cast %16 : vector<128x32xf32> to vector<1x128x32xf32>
    tpu.vector_store %arg9[%c0_12, %c0_13, %c0_14], %19 {strides = array<i32>} : memref<1x128x32xf32, #tpu.memory_space<vmem>>, vector<1x128x32xf32>,
    %cst_15 = arith.constant dense<0.000000e+00> : vector<128xf32>
    %20 = vector.multi_reduction <add>, %16, %cst_15 [1] : vector<128x32xf32> to vector<128xf32>
    %21 = vector.shape_cast %20 : vector<128xf32> to vector<128x1xf32>
    %cst_16 = arith.constant 3.200000e+01 : f32
    %22 = vector.broadcast %cst_16 : f32 to vector<128x1xf32>
    %23 = arith.divf %21, %22 : vector<128x1xf32>
    %24 = vector.broadcast %23 : vector<128x1xf32> to vector<128x32xf32>
    %25 = arith.subf %16, %24 : vector<128x32xf32>
    %26 = vector.broadcast %23 : vector<128x1xf32> to vector<128x32xf32>
    %27 = arith.subf %16, %26 : vector<128x32xf32>
    %28 = arith.mulf %25, %27 : vector<128x32xf32>
    %cst_17 = arith.constant dense<0.000000e+00> : vector<128xf32>
    %29 = vector.multi_reduction <add>, %28, %cst_17 [1] : vector<128x32xf32> to vector<128xf32>
    %30 = vector.shape_cast %29 : vector<128xf32> to vector<128x1xf32>
    %cst_18 = arith.constant 3.200000e+01 : f32
    %31 = vector.broadcast %cst_18 : f32 to vector<128x1xf32>
    %32 = arith.divf %30, %31 : vector<128x1xf32>
    %33 = vector.broadcast %23 : vector<128x1xf32> to vector<128x32xf32>
    %34 = arith.subf %16, %33 : vector<128x32xf32>
    %cst_19 = arith.constant 9.99999974E-6 : f32
    %35 = vector.broadcast %cst_19 : f32 to vector<128x1xf32>
    %36 = arith.addf %32, %35 : vector<128x1xf32>
    %37 = math.rsqrt %36 : vector<128x1xf32>
    %38 = vector.broadcast %37 : vector<128x1xf32> to vector<128x32xf32>
    %39 = arith.mulf %34, %38 : vector<128x32xf32>
    %c0_20 = arith.constant 0 : index
    %c0_21 = arith.constant 0 : index
    %c0_22 = arith.constant 0 : index
    %40 = vector.load %arg5[%c0_20, %c0_21, %c0_22] : memref<1x1x32xf32, #tpu.memory_space<vmem>>, vector<1x1x32xf32>
    %41 = vector.shape_cast %40 : vector<1x1x32xf32> to vector<1x32xf32>
    %42 = vector.broadcast %41 : vector<1x32xf32> to vector<128x32xf32>
    %43 = arith.mulf %39, %42 : vector<128x32xf32>
    %c0_23 = arith.constant 0 : index
    %c0_24 = arith.constant 0 : index
    %c0_25 = arith.constant 0 : index
    %44 = vector.load %arg6[%c0_23, %c0_24, %c0_25] : memref<1x1x32xf32, #tpu.memory_space<vmem>>, vector<1x1x32xf32>
    %45 = vector.shape_cast %44 : vector<1x1x32xf32> to vector<1x32xf32>
    %46 = vector.broadcast %45 : vector<1x32xf32> to vector<128x32xf32>
    %47 = arith.addf %43, %46 : vector<128x32xf32>
    %c0_26 = arith.constant 0 : index
    %c0_27 = arith.constant 0 : index
    %48 = vector.load %arg12[%c0_26, %c0_27] : memref<128x32xf32, #tpu.memory_space<vmem>>, vector<128x32xf32>
    tpu.vector_store %arg12[%c0_26, %c0_27], %47 {strides = array<i32>} : memref<128x32xf32, #tpu.memory_space<vmem>>, vector<128x32xf32>,
    %c2_i32 = arith.constant 2 : i32
    %49 = arith.cmpi eq, %arg0, %c2_i32 : i32
    %50 = arith.extui %49 : i1 to i32
    %c0_i32_28 = arith.constant 0 : i32
    %51 = arith.cmpi ne, %50, %c0_i32_28 : i32
    scf.if %51 {
      %c0_29 = arith.constant 0 : index
      %c0_30 = arith.constant 0 : index
      %52 = vector.load %arg10[%c0_29, %c0_30] : memref<128x32xf32, #tpu.memory_space<vmem>>, vector<128x32xf32>
      tpu.vector_store %arg10[%c0_29, %c0_30], %14 {strides = array<i32>} : memref<128x32xf32, #tpu.memory_space<vmem>>, vector<128x32xf32>,
      %53 = arith.truncf %47 : vector<128x32xf32> to vector<128x32xbf16>
      %c0_31 = arith.constant 0 : index
      %c0_32 = arith.constant 0 : index
      %54 = vector.load %arg7[%c0_31, %c0_32] : memref<32x4xbf16, #tpu.memory_space<vmem>>, vector<32x4xbf16>
      %cst_33 = arith.constant dense<0.000000e+00> : vector<128x4xf32>
      %55 = tpu.matmul %53, %54, %cst_33 {dimension_numbers = #tpu.dot_dimension_numbers<[1], [0], [0], [1], [0, 0, 1, 1], [], []>} : vector<128x32xbf16>, vector<32x4xbf16>, vector<128x4xf32> -> vector<128x4xf32>
      %c0_34 = arith.constant 0 : index
      %c0_35 = arith.constant 0 : index
      %56 = vector.load %arg8[%c0_34, %c0_35] : memref<1x4xf32, #tpu.memory_space<vmem>>, vector<1x4xf32>
      %57 = vector.broadcast %56 : vector<1x4xf32> to vector<128x4xf32>
      %58 = arith.addf %55, %57 : vector<128x4xf32>
      %cst_36 = arith.constant dense<0xFF800000> : vector<128xf32>
      %59 = vector.multi_reduction <maximumf>, %58, %cst_36 [1] : vector<128x4xf32> to vector<128xf32>
      %60 = vector.shape_cast %59 : vector<128xf32> to vector<128x1xf32>
      %61 = vector.broadcast %60 : vector<128x1xf32> to vector<128x4xf32>
      %62 = arith.subf %58, %61 : vector<128x4xf32>
      %63 = math.exp %62 : vector<128x4xf32>
      %cst_37 = arith.constant dense<0.000000e+00> : vector<128xf32>
      %64 = vector.multi_reduction <add>, %63, %cst_37 [1] : vector<128x4xf32> to vector<128xf32>
      %65 = vector.shape_cast %64 : vector<128xf32> to vector<128x1xf32>
      %66 = math.log %65 : vector<128x1xf32>
      %67 = vector.broadcast %66 : vector<128x1xf32> to vector<128x4xf32>
      %68 = arith.subf %62, %67 : vector<128x4xf32>
      %c0_38 = arith.constant 0 : index
      %c0_39 = arith.constant 0 : index
      %69 = vector.load %arg11[%c0_38, %c0_39] : memref<128x4xf32, #tpu.memory_space<vmem>>, vector<128x4xf32>
      tpu.vector_store %arg11[%c0_38, %c0_39], %68 {strides = array<i32>} : memref<128x4xf32, #tpu.memory_space<vmem>>, vector<128x4xf32>,
    } else {
    }
    return
  }
  func.func @transform_0(%arg0: i32) -> (i32, i32) {
    %c0_i32 = arith.constant 0 : i32
    %c0_i32_0 = arith.constant 0 : i32
    %c0_i32_1 = arith.constant 0 : i32
    return %c0_i32, %c0_i32_0 : i32, i32
  }
  func.func @transform_1(%arg0: i32) -> (i32, i32) {
    %c0_i32 = arith.constant 0 : i32
    %c0_i32_0 = arith.constant 0 : i32
    %c0_i32_1 = arith.constant 0 : i32
    return %c0_i32, %c0_i32_0 : i32, i32
  }
  func.func @transform_2(%arg0: i32) -> (i32, i32, i32) {
    %c0_i32 = arith.constant 0 : i32
    %c0_i32_0 = arith.constant 0 : i32
    %c0_i32_1 = arith.constant 0 : i32
    return %arg0, %c0_i32, %c0_i32_0 : i32, i32, i32
  }
  func.func @transform_3(%arg0: i32) -> (i32, i32, i32) {
    %c0_i32 = arith.constant 0 : i32
    %c0_i32_0 = arith.constant 0 : i32
    %c0_i32_1 = arith.constant 0 : i32
    return %arg0, %c0_i32, %c0_i32_0 : i32, i32, i32
  }
  func.func @transform_4(%arg0: i32) -> (i32, i32, i32) {
    %c0_i32 = arith.constant 0 : i32
    %c0_i32_0 = arith.constant 0 : i32
    %c0_i32_1 = arith.constant 0 : i32
    return %arg0, %c0_i32, %c0_i32_0 : i32, i32, i32
  }
  func.func @transform_5(%arg0: i32) -> (i32, i32, i32) {
    %c0_i32 = arith.constant 0 : i32
    %c0_i32_0 = arith.constant 0 : i32
    %c0_i32_1 = arith.constant 0 : i32
    return %arg0, %c0_i32, %c0_i32_0 : i32, i32, i32
  }
  func.func @transform_6(%arg0: i32) -> (i32, i32) {
    %c0_i32 = arith.constant 0 : i32
    %c0_i32_0 = arith.constant 0 : i32
    %c0_i32_1 = arith.constant 0 : i32
    return %c0_i32, %c0_i32_0 : i32, i32
  }
  func.func @transform_7(%arg0: i32) -> (i32, i32) {
    %c0_i32 = arith.constant 0 : i32
    %c0_i32_0 = arith.constant 0 : i32
    %c0_i32_1 = arith.constant 0 : i32
    return %c0_i32, %c0_i32_0 : i32, i32
  }
  func.func @transform_8(%arg0: i32) -> (i32, i32, i32) {
    %c0_i32 = arith.constant 0 : i32
    %c0_i32_0 = arith.constant 0 : i32
    %c0_i32_1 = arith.constant 0 : i32
    return %arg0, %c0_i32, %c0_i32_0 : i32, i32, i32
  }
  func.func @transform_9(%arg0: i32) -> (i32, i32) {
    %c0_i32 = arith.constant 0 : i32
    %c0_i32_0 = arith.constant 0 : i32
    %c0_i32_1 = arith.constant 0 : i32
    return %c0_i32, %c0_i32_0 : i32, i32
  }
  func.func @transform_10(%arg0: i32) -> (i32, i32) {
    %c0_i32 = arith.constant 0 : i32
    %c0_i32_0 = arith.constant 0 : i32
    %c0_i32_1 = arith.constant 0 : i32
    return %c0_i32, %c0_i32_0 : i32, i32
  }
}

</mosaic_0001>

<bundles_post_ra>
// kernel: tpu_custom_call.1
= control target key start
LH: loop header
LB: loop body
LE: loop exit
PB: predicated region body
PF: predicated region fallthrough
CT: control target
= control target key end

     0   :  { %16 = vsyncpa [#allocation4], 0  ;;  %s3157_s0 = inlined_call_operand.vmem [shape: bf16[128,128], index: 0, kind: input, shape index: {}]   ;;  %s3158_s1 = inlined_call_operand.vmem [shape: bf16[128,32], index: 1, kind: input, shape index: {}]   ;;  %s3159_s2 = inlined_call_operand.hbm [shape: bf16[3,32,32], index: 2, kind: input, shape index: {}]   ;;  %s3160_s3 = inlined_call_operand.vmem [shape: f32[3,1,32], index: 3, kind: input, shape index: {}]   ;;  %s3161_s4 = inlined_call_operand.vmem [shape: f32[3,1,32], index: 4, kind: input, shape index: {}]   ;;  %s3162_s5 = inlined_call_operand.vmem [shape: f32[3,1,32], index: 5, kind: input, shape index: {}]   ;;  %s3163_s6 = inlined_call_operand.vmem [shape: bf16[32,4], index: 6, kind: input, shape index: {}]   ;;  %s3164_s7 = inlined_call_operand.vmem [shape: f32[1,4], index: 7, kind: input, shape index: {}]   ;;  %s3165_s8 = inlined_call_operand.vmem [shape: f32[3,128,32], index: 8, kind: output, shape index: {0}]   ;;  %s3166_s9 = inlined_call_operand.vmem [shape: f32[128,32], index: 9, kind: output, shape index: {1}]   ;;  %s3167_s10 = inlined_call_operand.vmem [shape: f32[128,4], index: 10, kind: output, shape index: {2}]  }
   0x1   :  { %18 = vsyncpa [#allocation4 + $0x1], 0  ;;  %s2120_s13 = smov 0   ;;  %s2122_s14 = smov 0  }
   0x2   :  { %s2124_s15 = smov 0   ;;  %s2126_s16 = smov 0  }
   0x3 LB: > { %s2139_s17 = sadd.s32 4294967295, %s2059_s16   ;;  %s2142_s18 = sadd.s32 1, %s2059_s16   ;;  %s2059_s16 = sphi %s2126_s16, %s3179_s16   ;;  %s2055_s15 = sphi %s2124_s15, %s3178_s15   ;;  %s2051_s14 = sphi %s2122_s14, %s3177_s14   ;;  %s2047_s13 = sphi %s2120_s13, %s3176_s13  }
   0x4   : > { %s70_s19 = ssub.s32 %s2059_s16, %s2142_s18  ;;  %s73_s20 = sadd.s32 1, %s2055_s15 }
   0x5   : > { %p71_p0 = scmp.eq.s32.totalorder %s70_s19, 0  ;;  %p80_p1 = scmp.ne.s32.totalorder %s2055_s15, %s2051_s14 }
   0x6   : > { %p81_p2 = scmp.eq.s32.totalorder %s2059_s16, 0  ;;  %p86_p3 = scmp.ne.s32.totalorder %s2051_s14, %s2047_s13 }
   0x7   : > { %s2152_s21 = scalar_select %p71_p0, %s2055_s15, %s73_s20  }
   0x8   : > { %p82_p4 = por %p81_p2, %p80_p1  ;;  %p87_p5 = scmp.eq.s32.totalorder %s2139_s17, 0 }
   0x9   : > { %p1853_p6 = scmp.lt.s32.totalorder %s2059_s16, 3  ;;  %s310_s23 = sand.u32 1, %s2055_s15  }
   0xa   : > { %p2156_p7 = por %p87_p5, %p86_p3  ;;  %s1635_s24 = sshll.u32 %s310_s23, 4 }
   0xb   : > { %s1678_s25 = sshll.u32 %s2059_s16, 8  ;;  %s314_s29 = scalar_lea.vmem [#allocation3], %s1635_s24 }
   0xc   : > { %s3169_s22 = scalar_select %p2156_p7, 1, 0 }
   0xd   : > { %s2165_s28 = scalar_lea.hbm %s3159_s2, %s1678_s25  ;;  %s321_s30 = sshll.u32 %s314_s29, 4  ;;  %s2167_s30 = int_to_ptr.vmem [resolvable:$true] %s321_s30 }
   0xe   : > { %p2169_p8 = pnand %p1853_p6, %p82_p4  ;;  %s2174_s12 = scalar_lea.sflag [#allocation4], %s310_s23 }
   0xf   : > { %s1997_s13 = scalar_lea.hbm %s2165_s28, 256  ;;  %s2002_s24 = scalar_lea.hbm %s3159_s2, 768 }
  0x10   : > { %p1998_p10 = scmp.ne.s32.totalorder %s2165_s28, %s1997_s13  ;;  %p1999_p11 = pneg %p2169_p8 }
  0x11   : > { %p2003_p0 = scmp.lt.s32.totalorder %s2165_s28, %s3159_s2  ;;  %p2004_p1 = scmp.lt.s32.totalorder %s2002_s24, %s1997_s13 }
  0x12   : > { %p2000_p12 = pnand %p1999_p11, %p1998_p10 }
  0x13   : > { %p2005_p2 = por %p2004_p1, %p2003_p0 }
  0x14   : > { %p2001_p13 = pneg %p2000_p12 }
  0x16   : > { %p2006_p3 = pnand %p2005_p2, %p2001_p13 }
  0x18   : > { %2009 = shalt.err (!%p2006_p3)
}
  0x19   : > { %s2010_s23 = scalar_lea.vmem %s2167_s30, 256  ;;  %s2061_s27 = smov [#allocation3]  }
  0x1a   : > { %p2011_p4 = scmp.ne.s32.totalorder %s2167_s30, %s2010_s23  ;;  %s2015_s29 = sshll.u32 %s2061_s27, 4  ;;  %s2016_s29 = int_to_ptr.vmem [resolvable:$false] %s2015_s29 }
  0x1b   : > { %s2017_s19 = scalar_lea.vmem %s2016_s29, 512  ;;  %p2018_p10 = scmp.lt.s32.totalorder %s2167_s30, %s2016_s29 }
  0x1c   : > { %p2013_p5 = pnand %p2011_p4, %p1999_p11  ;;  %p2019_p12 = scmp.lt.s32.totalorder %s2017_s19, %s2010_s23 }
  0x1e   : > { %p2014_p6 = pneg %p2013_p5  ;;  %p2020_p9 = por %p2019_p12, %p2018_p10 }
  0x20   : > { %p2021_p7 = pnand %p2020_p9, %p2014_p6 }
  0x22   : > { %2024 = shalt.err (!%p2021_p7)
}
  0x23   : > { %s2062_s13 = smov 64   ;;  %s2063_s20 = smov 4  }
  0x24   : > { %1852 = dma.hbm_to_vmem [thread:$0]  (!%p2169_p8), %s2165_s28, 256, %s2167_s30, %s2174_s12, %s2062_s13, %s2062_s13, %s2063_s20  }
  0x25   : > { %p347_p11 = scmp.lt.s32.totalorder %s2059_s16, 4  ;;  %p3171_p13 = scmp.ge.s32.totalorder %s2059_s16, 1 }
  0x27   : > { %p348_p0 = pnand %p3171_p13, %p347_p11 }
  0x28   : > { %s353_s24 = sand.u32 (!%p348_p0), 1, %s2051_s14   ;;  %p3172_p7 = scmp.ne.s32.totalorder (!%p348_p0), %s3169_s22, 0 }
  0x29   : > { %351 = sbr.rel (%p348_p0) target bundleno = 1437 (0x59d), region = 52  ;;  %s2199_s25 = sshll.u32 (!%p348_p0), %s353_s24, 4 }
  0x2a   : > { %s354_s26 = scalar_lea.sflag (!%p348_p0), [#allocation4], %s353_s24 }
  0x2e   : > { %2042 = dma.done.wait (%p3172_p7), %s354_s26, 256  }
  0x2f   : > { %2044 = vsyncadd (%p3172_p7), %s354_s26, 4294967040  ;;  %p403_p8 = scmp.lt.s32.totalorder %s2139_s17, 2  ;;  %p1642_p9 = scmp.ne.s32.totalorder %s2139_s17, 0 }
  0x31   : > { %s2208_s28 = scalar_select %p403_p8, %s2139_s17, 2 }
  0x32   : > { %421 = sbr.rel (%p1642_p9) target bundleno = 81 (0x51), region = 60 }
  0x33   : > { %s405_s11 = scalar_lea.vmem %s3160_s3, %s2208_s28  ;;  %s408_s29 = scalar_lea.vmem %s3161_s4, %s2208_s28 }
  0x34   : > { %s1679_s20 = sshll.u32 %s2208_s28, 7 }
  0x35   : > { %s2226_s23 = scalar_lea.vmem %s3165_s8, %s1679_s20 }
  0x37   : > { %v1681_v0 = vld [vmem:[%s3158_s1] sm:$0xff]   ;;  %vm454_vm0 = vcmask 261120   ;;  %v1712_v1 = vld [vmem:[%s3158_s1 + $0x8] sm:$0xff]   ;;  %v1713_v2 = vld [vmem:[%s3158_s1 + $0x10] sm:$0xff]   ;;  %vm487_vm1 = vcmask 31744   ;;  %v2064_v10 = vmov 0.0  }
  0x38   : > { %v1682_v3 = vunpack.c.l.bf16 %v1681_v0  ;;  %v1683_v4 = vunpack.c.h.bf16 %v1681_v0  ;;  %v1686_v5 = vunpack.c.l.bf16 %v1712_v1  ;;  %v1687_v6 = vunpack.c.h.bf16 %v1712_v1  ;;  %v1714_v7 = vld [vmem:[%s3158_s1 + $0x18] sm:$0xff]   ;;  %v1715_v8 = vld [vmem:[%s3158_s1 + $0x20] sm:$0xff]   ;;  %v1716_v9 = vld [vmem:[%s3158_s1 + $0x28] sm:$0xff]   ;;  %471 = vst.msk [vmem:[%s3166_s9] sm:$0xff] %vm454_vm0, %v2064_v10 }
  0x39   : > { %472 = vst.msk [vmem:[%s3166_s9 + $0x8] sm:$0xff] %vm454_vm0, %v2064_v10  ;;  %473 = vst.msk [vmem:[%s3166_s9 + $0x10] sm:$0xff] %vm454_vm0, %v2064_v10  ;;  %v1690_v11 = vunpack.c.l.bf16 %v1713_v2  ;;  %v1691_v12 = vunpack.c.h.bf16 %v1713_v2  ;;  %v1694_v13 = vunpack.c.l.bf16 %v1714_v7  ;;  %v1695_v14 = vunpack.c.h.bf16 %v1714_v7  ;;  %v1717_v15 = vld [vmem:[%s3158_s1 + $0x30] sm:$0xff]   ;;  %v1718_v16 = vld [vmem:[%s3158_s1 + $0x38] sm:$0xff]  }
  0x3a   : > { %474 = vst.msk [vmem:[%s3166_s9 + $0x18] sm:$0xff] %vm454_vm0, %v2064_v10  ;;  %475 = vst.msk [vmem:[%s3166_s9 + $0x20] sm:$0xff] %vm454_vm0, %v2064_v10  ;;  %v1698_v17 = vunpack.c.l.bf16 %v1715_v8  ;;  %v1699_v18 = vunpack.c.h.bf16 %v1715_v8  ;;  %v1702_v19 = vunpack.c.l.bf16 %v1716_v9  ;;  %v1703_v20 = vunpack.c.h.bf16 %v1716_v9 }
  0x3b   : > { %476 = vst.msk [vmem:[%s3166_s9 + $0x28] sm:$0xff] %vm454_vm0, %v2064_v10  ;;  %477 = vst.msk [vmem:[%s3166_s9 + $0x30] sm:$0xff] %vm454_vm0, %v2064_v10  ;;  %v1706_v21 = vunpack.c.l.bf16 %v1717_v15  ;;  %v1707_v22 = vunpack.c.h.bf16 %v1717_v15  ;;  %v1710_v23 = vunpack.c.l.bf16 %v1718_v16  ;;  %v1711_v24 = vunpack.c.h.bf16 %v1718_v16 }
  0x3c   : > { %478 = vst.msk [vmem:[%s3166_s9 + $0x38] sm:$0xff] %vm454_vm0, %v2064_v10  ;;  %479 = vst.msk [vmem:[%s3166_s9 + $0x40] sm:$0xff] %vm454_vm0, %v2064_v10 }
  0x3d   : > { %480 = vst.msk [vmem:[%s3166_s9 + $0x48] sm:$0xff] %vm454_vm0, %v2064_v10  ;;  %481 = vst.msk [vmem:[%s3166_s9 + $0x50] sm:$0xff] %vm454_vm0, %v2064_v10 }
  0x3e   : > { %482 = vst.msk [vmem:[%s3166_s9 + $0x58] sm:$0xff] %vm454_vm0, %v2064_v10  ;;  %483 = vst.msk [vmem:[%s3166_s9 + $0x60] sm:$0xff] %vm454_vm0, %v2064_v10 }
  0x3f   : > { %484 = vst.msk [vmem:[%s3166_s9 + $0x68] sm:$0xff] %vm454_vm0, %v2064_v10  ;;  %485 = vst.msk [vmem:[%s3166_s9 + $0x70] sm:$0xff] %vm454_vm0, %v2064_v10 }
  0x40   : > { %486 = vst.msk [vmem:[%s3166_s9 + $0x78] sm:$0xff] %vm454_vm0, %v2064_v10  ;;  %455 = vst.msk [vmem:[#allocation2] sm:$0xff] %vm454_vm0, %v1682_v3 }
  0x41   : > { %488 = vst.msk [vmem:[%s3167_s10] sm:$0xff] %vm487_vm1, %v2064_v10  ;;  %489 = vst.msk [vmem:[%s3167_s10 + $0x8] sm:$0xff] %vm487_vm1, %v2064_v10 }
  0x42   : > { %490 = vst.msk [vmem:[%s3167_s10 + $0x10] sm:$0xff] %vm487_vm1, %v2064_v10  ;;  %491 = vst.msk [vmem:[%s3167_s10 + $0x18] sm:$0xff] %vm487_vm1, %v2064_v10 }
  0x43   : > { %492 = vst.msk [vmem:[%s3167_s10 + $0x20] sm:$0xff] %vm487_vm1, %v2064_v10  ;;  %493 = vst.msk [vmem:[%s3167_s10 + $0x28] sm:$0xff] %vm487_vm1, %v2064_v10 }
  0x44   : > { %494 = vst.msk [vmem:[%s3167_s10 + $0x30] sm:$0xff] %vm487_vm1, %v2064_v10  ;;  %495 = vst.msk [vmem:[%s3167_s10 + $0x38] sm:$0xff] %vm487_vm1, %v2064_v10 }
  0x45   : > { %496 = vst.msk [vmem:[%s3167_s10 + $0x40] sm:$0xff] %vm487_vm1, %v2064_v10  ;;  %497 = vst.msk [vmem:[%s3167_s10 + $0x48] sm:$0xff] %vm487_vm1, %v2064_v10 }
  0x46   : > { %498 = vst.msk [vmem:[%s3167_s10 + $0x50] sm:$0xff] %vm487_vm1, %v2064_v10  ;;  %499 = vst.msk [vmem:[%s3167_s10 + $0x58] sm:$0xff] %vm487_vm1, %v2064_v10 }
  0x47   : > { %500 = vst.msk [vmem:[%s3167_s10 + $0x60] sm:$0xff] %vm487_vm1, %v2064_v10  ;;  %501 = vst.msk [vmem:[%s3167_s10 + $0x68] sm:$0xff] %vm487_vm1, %v2064_v10 }
  0x48   : > { %502 = vst.msk [vmem:[%s3167_s10 + $0x70] sm:$0xff] %vm487_vm1, %v2064_v10  ;;  %503 = vst.msk [vmem:[%s3167_s10 + $0x78] sm:$0xff] %vm487_vm1, %v2064_v10 }
  0x49   : > { %456 = vst.msk [vmem:[#allocation2 + $0x8] sm:$0xff] %vm454_vm0, %v1683_v4  ;;  %457 = vst.msk [vmem:[#allocation2 + $0x10] sm:$0xff] %vm454_vm0, %v1686_v5 }
  0x4a   : > { %458 = vst.msk [vmem:[#allocation2 + $0x18] sm:$0xff] %vm454_vm0, %v1687_v6  ;;  %459 = vst.msk [vmem:[#allocation2 + $0x20] sm:$0xff] %vm454_vm0, %v1690_v11 }
  0x4b   : > { %460 = vst.msk [vmem:[#allocation2 + $0x28] sm:$0xff] %vm454_vm0, %v1691_v12  ;;  %461 = vst.msk [vmem:[#allocation2 + $0x30] sm:$0xff] %vm454_vm0, %v1694_v13 }
  0x4c   : > { %462 = vst.msk [vmem:[#allocation2 + $0x38] sm:$0xff] %vm454_vm0, %v1695_v14  ;;  %463 = vst.msk [vmem:[#allocation2 + $0x40] sm:$0xff] %vm454_vm0, %v1698_v17 }
  0x4d   : > { %464 = vst.msk [vmem:[#allocation2 + $0x48] sm:$0xff] %vm454_vm0, %v1699_v18  ;;  %465 = vst.msk [vmem:[#allocation2 + $0x50] sm:$0xff] %vm454_vm0, %v1702_v19 }
  0x4e   : > { %466 = vst.msk [vmem:[#allocation2 + $0x58] sm:$0xff] %vm454_vm0, %v1703_v20  ;;  %467 = vst.msk [vmem:[#allocation2 + $0x60] sm:$0xff] %vm454_vm0, %v1706_v21 }
  0x4f   : > { %468 = vst.msk [vmem:[#allocation2 + $0x68] sm:$0xff] %vm454_vm0, %v1707_v22  ;;  %469 = vst.msk [vmem:[#allocation2 + $0x70] sm:$0xff] %vm454_vm0, %v1710_v23 }
  0x50   : > { %470 = vst.msk [vmem:[#allocation2 + $0x78] sm:$0xff] %vm454_vm0, %v1711_v24 }
  0x51 PF: > { %s3173_s30 = scalar_lea.vmem [#allocation3], %s2199_s25  ;;  %v504_v27 = vld [vmem:[#allocation2] sm:$0xff]  ;;  %v505_v28 = vld [vmem:[#allocation2 + $0x8] sm:$0xff]  ;;  %vm544_vm2 = vcmask 261120   ;;  %v506_v30 = vld [vmem:[#allocation2 + $0x10] sm:$0xff]  ;;  %p1664_p1 = scmp.ne.s32.totalorder %s2139_s17, 2 }
  0x52   : > { %v1889_v25 = vld [vmem:[%s3173_s30 + $0x8] sm:$0xff]   ;;  %s3174_s12 = smov %s3173_s30  ;;  %v520_v29 = vpack.c.bf16 %v505_v28, %v504_v27  ;;  %v508_v32 = vld [vmem:[#allocation2 + $0x20] sm:$0xff]  ;;  %v510_v36 = vld [vmem:[#allocation2 + $0x30] sm:$0xff]  ;;  %s3175_s30 = scalar_lea.vmem %s3162_s5, %s2208_s28 }
  0x53   : > { %v1890_v26 = vld [vmem:[%s3174_s12] sm:$0xff]   ;;  %1755 = vmatprep.subr.bf16.mxu0 %v1889_v25  ;;  %v507_v31 = vld [vmem:[#allocation2 + $0x18] sm:$0xff]  ;;  %v509_v33 = vld [vmem:[#allocation2 + $0x28] sm:$0xff] }
  0x54   : > { %1756 = vmatpush3.bf16.msra.mxu0 %v1889_v25  ;;  %1759 = vmatprep.mubr.msk.bf16.mxu0 %vm544_vm2, %v520_v29  ;;  %v521_v34 = vpack.c.bf16 %v507_v31, %v506_v30  ;;  %v522_v35 = vpack.c.bf16 %v509_v33, %v508_v32  ;;  %v511_v37 = vld [vmem:[#allocation2 + $0x38] sm:$0xff]  ;;  %v512_v38 = vld [vmem:[#allocation2 + $0x40] sm:$0xff]  ;;  %v513_v39 = vld [vmem:[#allocation2 + $0x48] sm:$0xff] }
  0x55   : > { %1757 = vmatprep.subr.bf16.mxu0 %v1890_v26  ;;  %v523_v40 = vpack.c.bf16 %v511_v37, %v510_v36  ;;  %v524_v41 = vpack.c.bf16 %v513_v39, %v512_v38  ;;  %v514_v42 = vld [vmem:[#allocation2 + $0x50] sm:$0xff]  ;;  %v515_v43 = vld [vmem:[#allocation2 + $0x58] sm:$0xff]  ;;  %v516_v44 = vld [vmem:[#allocation2 + $0x60] sm:$0xff] }
  0x56   : > { %v517_v45 = vld [vmem:[#allocation2 + $0x68] sm:$0xff]  ;;  %v525_v46 = vpack.c.bf16 %v515_v43, %v514_v42  ;;  %v518_v48 = vld [vmem:[#allocation2 + $0x70] sm:$0xff]  ;;  %v1891_v51 = vld [vmem:[%s3157_s0] sm:$0xff]  }
  0x57   : > { %v526_v47 = vpack.c.bf16 %v517_v45, %v516_v44  ;;  %v519_v49 = vld [vmem:[#allocation2 + $0x78] sm:$0xff]  ;;  %v1892_v52 = vld [vmem:[%s3157_s0 + $0x10] sm:$0xff]   ;;  %v1893_v13 = vld [vmem:[%s3157_s0 + $0x8] sm:$0xff]  }
  0x58   : > { %1758 = vmatpush3.bf16.msra.mxu0 %v1890_v26  ;;  %v527_v50 = vpack.c.bf16 %v519_v49, %v518_v48  ;;  %1795 = vmatprep.mubr.bf16.mxu1 %v1892_v52  ;;  %v1894_v14 = vld [vmem:[%s3157_s0 + $0x18] sm:$0xff]   ;;  %v1895_v15 = vld [vmem:[%s3157_s0 + $0x20] sm:$0xff]   ;;  %v1896_v16 = vld [vmem:[%s3157_s0 + $0x28] sm:$0xff]  }
  0x59   : > { %v1897_v17 = vld [vmem:[%s3157_s0 + $0x30] sm:$0xff]   ;;  %v1898_v18 = vld [vmem:[%s3157_s0 + $0x38] sm:$0xff]   ;;  %v2438_v19 = vld [vmem:[%s405_s11] ss:$0 sm:$0xff] }
  0x5b   : > { %1760 = vmatmul.mubr.msk.bf16.vlgmr.msra.gmra.mxu0 %vm544_vm2, %v521_v34 }
  0x5c   : > { %1763 = vmatprep.mubr.msk.bf16.mxu0 %vm544_vm2, %v522_v35 }
  0x63   : > { %1764 = vmatmul.mubr.msk.bf16.gmra.mxu0 %vm544_vm2, %v523_v40 }
  0x64   : > { %1767 = vmatprep.mubr.msk.bf16.mxu0 %vm544_vm2, %v524_v41 }
  0x6b   : > { %1768 = vmatmul.mubr.msk.bf16.gmra.mxu0 %vm544_vm2, %v525_v46 }
  0x6c   : > { %1771 = vmatprep.mubr.msk.bf16.mxu0 %vm544_vm2, %v526_v47 }
  0x73   : > { %1772 = vmatmul.mubr.msk.bf16.gmra.mxu0 %vm544_vm2, %v527_v50 }
  0x74   : > { %1791 = vmatprep.mubr.bf16.mxu0 %v1891_v51 }
 0x11b   : > { %v1761_v53 = vpop.f32.mrf.mxu0 }
 0x11d   : > { %v603_v54 = vpop.f32.mrf.mxu0 }
 0x11f   : > { %v1762_v55 = vpop.f32.mrf.mxu0 }
 0x120   : > { %v683_v11 = vpack.c.bf16 %v1762_v55, %v1761_v53 }
 0x121   : > { %v606_v56 = vpop.f32.mrf.mxu0 }
 0x122   : > { %v682_v12 = vpack.c.bf16 %v606_v56, %v603_v54 }
 0x123   : > { %v1765_v57 = vpop.f32.mrf.mxu0 }
 0x125   : > { %v619_v58 = vpop.f32.mrf.mxu0 }
 0x127   : > { %v1766_v59 = vpop.f32.mrf.mxu0 }
 0x128   : > { %v685_v9 = vpack.c.bf16 %v1766_v59, %v1765_v57 }
 0x129   : > { %v622_v60 = vpop.f32.mrf.mxu0 }
 0x12a   : > { %v684_v10 = vpack.c.bf16 %v622_v60, %v619_v58 }
 0x12b   : > { %v1769_v61 = vpop.f32.mrf.mxu0 }
 0x12d   : > { %v635_v62 = vpop.f32.mrf.mxu0 }
 0x12f   : > { %v1770_v63 = vpop.f32.mrf.mxu0 }
 0x130   : > { %v687_v7 = vpack.c.bf16 %v1770_v63, %v1769_v61 }
 0x131   : > { %v638_v0 = vpop.f32.mrf.mxu0 }
 0x132   : > { %v686_v8 = vpack.c.bf16 %v638_v0, %v635_v62 }
 0x133   : > { %v1773_v1 = vpop.f32.mrf.mxu0 }
 0x135   : > { %v651_v2 = vpop.f32.mrf.mxu0 }
 0x137   : > { %v1774_v3 = vpop.f32.mrf.mxu0 }
 0x138   : > { %v689_v4 = vpack.c.bf16 %v1774_v3, %v1773_v1 }
 0x139   : > { %v654_v5 = vpop.f32.mrf.mxu0 }
 0x13a   : > { %v688_v6 = vpack.c.bf16 %v654_v5, %v651_v2  ;;  %1775 = vmatprep.subr.bf16.mxu0 %v689_v4  ;;  %1827 = vmatprep.subr.bf16.mxu1 %v689_v4 }
 0x13b   : > { %1776 = vmatpush3.bf16.msra.mxu0 %v689_v4  ;;  %1835 = vmatpush3.bf16.msra.mxu1 %v689_v4 }
 0x13c   : > { %1777 = vmatprep.subr.bf16.mxu0 %v688_v6  ;;  %1828 = vmatprep.subr.bf16.mxu1 %v688_v6 }
 0x13f   : > { %1778 = vmatpush3.bf16.msra.mxu0 %v688_v6  ;;  %1836 = vmatpush3.bf16.msra.mxu1 %v688_v6 }
 0x140   : > { %1779 = vmatprep.subr.bf16.mxu0 %v687_v7  ;;  %1829 = vmatprep.subr.bf16.mxu1 %v687_v7 }
 0x143   : > { %1780 = vmatpush3.bf16.msra.mxu0 %v687_v7  ;;  %1837 = vmatpush3.bf16.msra.mxu1 %v687_v7 }
 0x144   : > { %1781 = vmatprep.subr.bf16.mxu0 %v686_v8  ;;  %1830 = vmatprep.subr.bf16.mxu1 %v686_v8 }
 0x147   : > { %1782 = vmatpush3.bf16.msra.mxu0 %v686_v8  ;;  %1838 = vmatpush3.bf16.msra.mxu1 %v686_v8 }
 0x148   : > { %1783 = vmatprep.subr.bf16.mxu0 %v685_v9  ;;  %1831 = vmatprep.subr.bf16.mxu1 %v685_v9 }
 0x14b   : > { %1784 = vmatpush3.bf16.msra.mxu0 %v685_v9  ;;  %1839 = vmatpush3.bf16.msra.mxu1 %v685_v9 }
 0x14c   : > { %1785 = vmatprep.subr.bf16.mxu0 %v684_v10  ;;  %1832 = vmatprep.subr.bf16.mxu1 %v684_v10 }
 0x14f   : > { %1786 = vmatpush3.bf16.msra.mxu0 %v684_v10  ;;  %1840 = vmatpush3.bf16.msra.mxu1 %v684_v10 }
 0x150   : > { %1787 = vmatprep.subr.bf16.mxu0 %v683_v11  ;;  %1833 = vmatprep.subr.bf16.mxu1 %v683_v11 }
 0x153   : > { %1788 = vmatpush3.bf16.msra.mxu0 %v683_v11  ;;  %1841 = vmatpush3.bf16.msra.mxu1 %v683_v11 }
 0x154   : > { %1789 = vmatprep.subr.bf16.mxu0 %v682_v12  ;;  %1834 = vmatprep.subr.bf16.mxu1 %v682_v12 }
 0x157   : > { %1790 = vmatpush3.bf16.msra.mxu0 %v682_v12  ;;  %1842 = vmatpush3.bf16.msra.mxu1 %v682_v12 }
 0x15a   : > { %1792 = vmatmul.mubr.bf16.vlgmr.msra.gmra.mxu0 %v1893_v13  ;;  %1796 = vmatmul.mubr.bf16.vlgmr.msra.gmra.mxu1 %v1894_v14 }
 0x15b   : > { %1799 = vmatprep.mubr.bf16.mxu1 %v1895_v15 }
 0x162   : > { %1800 = vmatmul.mubr.bf16.gmra.mxu1 %v1896_v16 }
 0x163   : > { %1803 = vmatprep.mubr.bf16.mxu1 %v1897_v17 }
 0x16a   : > { %1804 = vmatmul.mubr.bf16.gmra.mxu1 %v1898_v18 }
 0x21a   : > { %v1793_v20 = vpop.f32.mrf.mxu0  ;;  %v1797_v21 = vpop.f32.mrf.mxu1 }
 0x21b   : > { %v2441_v22 = vadd.f32 %v1793_v20, %v2438_v19  ;;  %v2444_v23 = vadd.f32 %v1797_v21, %v2438_v19 }
 0x21c   : > { %v779_v24 = vpop.f32.mrf.mxu0  ;;  %v795_v25 = vpop.f32.mrf.mxu1 }
 0x21d   : > { %v2447_v26 = vmax.f32 %v2441_v22, 0.0  ;;  %v2450_v27 = vmax.f32 %v2444_v23, 0.0  ;;  %v2453_v28 = vadd.f32 %v2438_v19, %v779_v24  ;;  %v2456_v29 = vadd.f32 %v2438_v19, %v795_v25 }
 0x21e   : > { %v1794_v30 = vpop.f32.mrf.mxu0  ;;  %v1798_v31 = vpop.f32.mrf.mxu1 }
 0x21f   : > { %860 = vst.msk [vmem:[%s2226_s23 + $0x10] sm:$0xff] %vm544_vm2, %v2447_v26  ;;  %864 = vst.msk [vmem:[%s2226_s23 + $0x30] sm:$0xff] %vm544_vm2, %v2450_v27  ;;  %v2465_v32 = vmax.f32 %v2453_v28, 0.0  ;;  %v2468_v33 = vmax.f32 %v2456_v29, 0.0  ;;  %v2471_v34 = vadd.f32 %v1794_v30, %v2438_v19  ;;  %v2474_v35 = vadd.f32 %v1798_v31, %v2438_v19 }
 0x220   : > { %v892_v36 = vsel %vm544_vm2, %v2450_v27, 0.0  ;;  %v798_v37 = vpop.f32.mrf.mxu1  ;;  %v880_v38 = vsel %vm544_vm2, %v2447_v26, 0.0  ;;  %v782_v39 = vpop.f32.mrf.mxu0 }
 0x221   : > { %858 = vst.msk [vmem:[%s2226_s23] sm:$0xff] %vm544_vm2, %v2465_v32  ;;  %862 = vst.msk [vmem:[%s2226_s23 + $0x20] sm:$0xff] %vm544_vm2, %v2468_v33  ;;  %v2487_v40 = vmax.f32 %v2471_v34, 0.0  ;;  %v2490_v41 = vmax.f32 %v2474_v35, 0.0  ;;  %893 = vadd.xlane.f32.xlu0 %v892_v36  ;;  %v2493_v42 = vadd.f32 %v2438_v19, %v798_v37  ;;  %881 = vadd.xlane.f32.xlu1 %v880_v38  ;;  %v874_v49 = vsel %vm544_vm2, %v2465_v32, 0.0 }
 0x222   : > { %v2496_v43 = vadd.f32 %v2438_v19, %v782_v39  ;;  %v1801_v44 = vpop.f32.mrf.mxu1  ;;  %v886_v57 = vsel %vm544_vm2, %v2468_v33, 0.0 }
 0x223   : > { %861 = vst.msk [vmem:[%s2226_s23 + $0x18] sm:$0xff] %vm544_vm2, %v2487_v40  ;;  %865 = vst.msk [vmem:[%s2226_s23 + $0x38] sm:$0xff] %vm544_vm2, %v2490_v41  ;;  %v2505_v45 = vmax.f32 %v2493_v42, 0.0  ;;  %v2511_v47 = vadd.f32 %v1801_v44, %v2438_v19  ;;  %v883_v48 = vsel %vm544_vm2, %v2487_v40, 0.0  ;;  %v895_v56 = vsel %vm544_vm2, %v2490_v41, 0.0 }
 0x224   : > { %v2508_v46 = vmax.f32 %v2496_v43, 0.0  ;;  %v811_v50 = vpop.f32.mrf.mxu1 }
 0x225   : > { %863 = vst.msk [vmem:[%s2226_s23 + $0x28] sm:$0xff] %vm544_vm2, %v2505_v45  ;;  %v2524_v51 = vmax.f32 %v2511_v47, 0.0  ;;  %884 = vadd.xlane.f32.xlu1 %v883_v48  ;;  %875 = vadd.xlane.f32.xlu0 %v874_v49  ;;  %v2527_v52 = vadd.f32 %v2438_v19, %v811_v50  ;;  %v889_v0 = vsel %vm544_vm2, %v2505_v45, 0.0 }
 0x226   : > { %859 = vst.msk [vmem:[%s2226_s23 + $0x8] sm:$0xff] %vm544_vm2, %v2508_v46  ;;  %v1802_v53 = vpop.f32.mrf.mxu1  ;;  %v877_v1 = vsel %vm544_vm2, %v2508_v46, 0.0 }
 0x227   : > { %868 = vst.msk [vmem:[%s2226_s23 + $0x50] sm:$0xff] %vm544_vm2, %v2524_v51  ;;  %v2533_v54 = vmax.f32 %v2527_v52, 0.0  ;;  %v2536_v55 = vadd.f32 %v1802_v53, %v2438_v19  ;;  %v904_v9 = vsel %vm544_vm2, %v2524_v51, 0.0 }
 0x228   : > { %v814_v58 = vpop.f32.mrf.mxu1 }
 0x229   : > { %866 = vst.msk [vmem:[%s2226_s23 + $0x40] sm:$0xff] %vm544_vm2, %v2533_v54  ;;  %v2546_v59 = vmax.f32 %v2536_v55, 0.0  ;;  %896 = vadd.xlane.f32.xlu1 %v895_v56  ;;  %887 = vadd.xlane.f32.xlu0 %v886_v57  ;;  %v2549_v60 = vadd.f32 %v2438_v19, %v814_v58  ;;  %v898_v15 = vsel %vm544_vm2, %v2533_v54, 0.0 }
 0x22a   : > { %v1805_v61 = vpop.f32.mrf.mxu1 }
 0x22b   : > { %869 = vst.msk [vmem:[%s2226_s23 + $0x58] sm:$0xff] %vm544_vm2, %v2546_v59  ;;  %v2555_v62 = vmax.f32 %v2549_v60, 0.0  ;;  %v2558_v63 = vadd.f32 %v1805_v61, %v2438_v19  ;;  %v907_v8 = vsel %vm544_vm2, %v2546_v59, 0.0 }
 0x22c   : > { %v827_v2 = vpop.f32.mrf.mxu1 }
 0x22d   : > { %867 = vst.msk [vmem:[%s2226_s23 + $0x48] sm:$0xff] %vm544_vm2, %v2555_v62  ;;  %v2568_v3 = vmax.f32 %v2558_v63, 0.0  ;;  %890 = vadd.xlane.f32.xlu1 %v889_v0  ;;  %878 = vadd.xlane.f32.xlu0 %v877_v1  ;;  %v2571_v4 = vadd.f32 %v2438_v19, %v827_v2  ;;  %v901_v14 = vsel %vm544_vm2, %v2555_v62, 0.0 }
 0x22e   : > { %v1806_v5 = vpop.f32.mrf.mxu1 }
 0x22f   : > { %872 = vst.msk [vmem:[%s2226_s23 + $0x70] sm:$0xff] %vm544_vm2, %v2568_v3  ;;  %v2577_v6 = vmax.f32 %v2571_v4, 0.0  ;;  %v2580_v7 = vadd.f32 %v1806_v5, %v2438_v19 }
 0x230   : > { %v830_v10 = vpop.f32.mrf.mxu1 }
 0x231   : > { %870 = vst.msk [vmem:[%s2226_s23 + $0x60] sm:$0xff] %vm544_vm2, %v2577_v6  ;;  %v2590_v11 = vmax.f32 %v2580_v7, 0.0  ;;  %908 = vadd.xlane.f32.xlu1 %v907_v8  ;;  %905 = vadd.xlane.f32.xlu0 %v904_v9  ;;  %v2593_v12 = vadd.f32 %v2438_v19, %v830_v10  ;;  %v910_v17 = vsel %vm544_vm2, %v2577_v6, 0.0  ;;  %v916_v19 = vsel %vm544_vm2, %v2568_v3, 0.0 }
 0x233   : > { %873 = vst.msk [vmem:[%s2226_s23 + $0x78] sm:$0xff] %vm544_vm2, %v2590_v11  ;;  %v2599_v13 = vmax.f32 %v2593_v12, 0.0  ;;  %v919_v18 = vsel %vm544_vm2, %v2590_v11, 0.0 }
 0x235   : > { %871 = vst.msk [vmem:[%s2226_s23 + $0x68] sm:$0xff] %vm544_vm2, %v2599_v13  ;;  %902 = vadd.xlane.f32.xlu1 %v901_v14  ;;  %899 = vadd.xlane.f32.xlu0 %v898_v15  ;;  %v913_v16 = vsel %vm544_vm2, %v2599_v13, 0.0 }
 0x239   : > { %914 = vadd.xlane.f32.xlu1 %v913_v16  ;;  %911 = vadd.xlane.f32.xlu0 %v910_v17 }
 0x23d   : > { %920 = vadd.xlane.f32.xlu1 %v919_v18  ;;  %917 = vadd.xlane.f32.xlu0 %v916_v19 }
 0x2aa   : > { %v894_v20 = vpop.xlane.xlu0 %893  ;;  %v882_v21 = vpop.xlane.xlu1 %881 }
 0x2ab   : > { %v929_v24 = vmul.f32 0.03125, %v894_v20  ;;  %v925_v25 = vmul.f32 0.03125, %v882_v21 }
 0x2ad   : > { %v2617_v30 = vsub.f32 %v2450_v27, %v929_v24  ;;  %v2620_v31 = vsub.f32 %v2447_v26, %v925_v25 }
 0x2ae   : > { %v885_v36 = vpop.xlane.xlu1 %884  ;;  %v876_v37 = vpop.xlane.xlu0 %875 }
 0x2af   : > { %v926_v38 = vmul.f32 0.03125, %v885_v36  ;;  %v923_v39 = vmul.f32 0.03125, %v876_v37  ;;  %v957_v44 = vmul.f32 %v2620_v31, %v2620_v31  ;;  %v961_v27 = vmul.f32 %v2617_v30, %v2617_v30 }
 0x2b1   : > { %v2625_v48 = vsub.f32 %v2487_v40, %v926_v38  ;;  %v2628_v49 = vsub.f32 %v2465_v32, %v923_v39  ;;  %v977_v50 = vsel %vm544_vm2, %v957_v44, 0.0  ;;  %v989_v1 = vsel %vm544_vm2, %v961_v27, 0.0 }
 0x2b2   : > { %v897_v26 = vpop.xlane.xlu1 %896  ;;  %978 = vadd.xlane.f32.xlu0 %v977_v50  ;;  %v888_v53 = vpop.xlane.xlu0 %887 }
 0x2b3   : > { %v930_v56 = vmul.f32 0.03125, %v897_v26  ;;  %v927_v57 = vmul.f32 0.03125, %v888_v53  ;;  %v958_v58 = vmul.f32 %v2625_v48, %v2625_v48  ;;  %v955_v40 = vmul.f32 %v2628_v49, %v2628_v49 }
 0x2b5   : > { %v2638_v61 = vsub.f32 %v2490_v41, %v930_v56  ;;  %v2641_v32 = vsub.f32 %v2468_v33, %v927_v57  ;;  %v980_v0 = vsel %vm544_vm2, %v958_v58, 0.0  ;;  %v971_v14 = vsel %vm544_vm2, %v955_v40, 0.0 }
 0x2b6   : > { %981 = vadd.xlane.f32.xlu1 %v980_v0  ;;  %v891_v2 = vpop.xlane.xlu1 %890  ;;  %990 = vadd.xlane.f32.xlu0 %v989_v1  ;;  %v879_v5 = vpop.xlane.xlu0 %878 }
 0x2b7   : > { %v928_v8 = vmul.f32 0.03125, %v891_v2  ;;  %v924_v9 = vmul.f32 0.03125, %v879_v5  ;;  %v962_v10 = vmul.f32 %v2638_v61, %v2638_v61  ;;  %v959_v16 = vmul.f32 %v2641_v32, %v2641_v32 }
 0x2b9   : > { %v2649_v41 = vsub.f32 %v2505_v45, %v928_v8  ;;  %v2652_v33 = vsub.f32 %v2508_v46, %v924_v9  ;;  %v992_v15 = vsel %vm544_vm2, %v962_v10, 0.0  ;;  %v983_v25 = vsel %vm544_vm2, %v959_v16, 0.0 }
 0x2ba   : > { %993 = vadd.xlane.f32.xlu1 %v992_v15  ;;  %v909_v17 = vpop.xlane.xlu1 %908  ;;  %972 = vadd.xlane.f32.xlu0 %v971_v14  ;;  %v906_v18 = vpop.xlane.xlu0 %905 }
 0x2bb   : > { %v934_v19 = vmul.f32 0.03125, %v909_v17  ;;  %v933_v20 = vmul.f32 0.03125, %v906_v18  ;;  %v956_v21 = vmul.f32 %v2652_v33, %v2652_v33  ;;  %v960_v45 = vmul.f32 %v2649_v41, %v2649_v41 }
 0x2bd   : > { %v2662_v46 = vsub.f32 %v2546_v59, %v934_v19  ;;  %v2665_v24 = vsub.f32 %v2524_v51, %v933_v20  ;;  %v974_v36 = vsel %vm544_vm2, %v956_v21, 0.0  ;;  %v986_v27 = vsel %vm544_vm2, %v960_v45, 0.0 }
 0x2be   : > { %v903_v37 = vpop.xlane.xlu1 %902  ;;  %984 = vadd.xlane.f32.xlu0 %v983_v25  ;;  %975 = vadd.xlane.f32.xlu1 %v974_v36  ;;  %v900_v38 = vpop.xlane.xlu0 %899 }
 0x2bf   : > { %v932_v39 = vmul.f32 0.03125, %v903_v37  ;;  %v931_v44 = vmul.f32 0.03125, %v900_v38  ;;  %v965_v50 = vmul.f32 %v2665_v24, %v2665_v24  ;;  %v966_v53 = vmul.f32 %v2662_v46, %v2662_v46 }
 0x2c1   : > { %v2673_v59 = vsub.f32 %v2555_v62, %v932_v39  ;;  %v2676_v51 = vsub.f32 %v2533_v54, %v931_v44  ;;  %v1001_v26 = vsel %vm544_vm2, %v965_v50, 0.0  ;;  %v1004_v2 = vsel %vm544_vm2, %v966_v53, 0.0 }
 0x2c2   : > { %v915_v56 = vpop.xlane.xlu1 %914  ;;  %987 = vadd.xlane.f32.xlu1 %v986_v27  ;;  %1002 = vadd.xlane.f32.xlu0 %v1001_v26  ;;  %v912_v57 = vpop.xlane.xlu0 %911 }
 0x2c3   : > { %v936_v58 = vmul.f32 0.03125, %v915_v56  ;;  %v935_v40 = vmul.f32 0.03125, %v912_v57  ;;  %v963_v0 = vmul.f32 %v2676_v51, %v2676_v51  ;;  %v964_v62 = vmul.f32 %v2673_v59, %v2673_v59 }
 0x2c5   : > { %v2686_v54 = vsub.f32 %v2599_v13, %v936_v58  ;;  %v2689_v1 = vsub.f32 %v2577_v6, %v935_v40  ;;  %v995_v5 = vsel %vm544_vm2, %v963_v0, 0.0  ;;  %v998_v16 = vsel %vm544_vm2, %v964_v62, 0.0 }
 0x2c6   : > { %v921_v8 = vpop.xlane.xlu1 %920  ;;  %1005 = vadd.xlane.f32.xlu1 %v1004_v2  ;;  %996 = vadd.xlane.f32.xlu0 %v995_v5  ;;  %v918_v9 = vpop.xlane.xlu0 %917 }
 0x2c7   : > { %v938_v10 = vmul.f32 0.03125, %v921_v8  ;;  %v937_v14 = vmul.f32 0.03125, %v918_v9  ;;  %v967_v15 = vmul.f32 %v2689_v1, %v2689_v1  ;;  %v968_v18 = vmul.f32 %v2686_v54, %v2686_v54 }
 0x2c9   : > { %v2697_v13 = vsub.f32 %v2590_v11, %v938_v10  ;;  %v2700_v6 = vsub.f32 %v2568_v3, %v937_v14  ;;  %v1007_v17 = vsel %vm544_vm2, %v967_v15, 0.0  ;;  %v1010_v20 = vsel %vm544_vm2, %v968_v18, 0.0  ;;  %v2717_v18 = vld [vmem:[%s408_s29] ss:$0 sm:$0xff] }
 0x2ca   : > { %999 = vadd.xlane.f32.xlu1 %v998_v16  ;;  %1008 = vadd.xlane.f32.xlu0 %v1007_v17 }
 0x2cb   : > { %v969_v19 = vmul.f32 %v2700_v6, %v2700_v6  ;;  %v970_v11 = vmul.f32 %v2697_v13, %v2697_v13 }
 0x2cd   : > { %v1013_v21 = vsel %vm544_vm2, %v969_v19, 0.0  ;;  %v1016_v3 = vsel %vm544_vm2, %v970_v11, 0.0  ;;  %v2725_v11 = vld [vmem:[%s3175_s30] ss:$0 sm:$0xff] }
 0x2ce   : > { %1011 = vadd.xlane.f32.xlu1 %v1010_v20  ;;  %1014 = vadd.xlane.f32.xlu0 %v1013_v21 }
 0x2d2   : > { %1017 = vadd.xlane.f32.xlu1 %v1016_v3 }
 0x33b   : > { %v979_v45 = vpop.xlane.xlu0 %978 }
 0x33c   : > { %v1021_v25 = vmul.f32 0.03125, %v979_v45 }
 0x33e   : > { %v1037_v36 = vadd.f32 1e-05, %v1021_v25 }
 0x33f   : > { %v982_v37 = vpop.xlane.xlu1 %981  ;;  %v991_v38 = vpop.xlane.xlu0 %990 }
 0x340   : > { %1899 = vrsqrt.f32 %v1037_v36  ;;  %v1022_v39 = vmul.f32 0.03125, %v982_v37  ;;  %v1025_v44 = vmul.f32 0.03125, %v991_v38 }
 0x342   : > { %v1038_v50 = vadd.f32 1e-05, %v1022_v39  ;;  %v1041_v27 = vadd.f32 1e-05, %v1025_v44 }
 0x343   : > { %v994_v26 = vpop.xlane.xlu1 %993  ;;  %v973_v53 = vpop.xlane.xlu0 %972 }
 0x344   : > { %1901 = vrsqrt.f32 %v1038_v50  ;;  %v1026_v56 = vmul.f32 0.03125, %v994_v26  ;;  %v1019_v57 = vmul.f32 0.03125, %v973_v53 }
 0x345   : > { %1903 = vrsqrt.f32 %v1041_v27 }
 0x346   : > { %v1042_v58 = vadd.f32 1e-05, %v1026_v56  ;;  %v1035_v40 = vadd.f32 1e-05, %v1019_v57 }
 0x347   : > { %v976_v0 = vpop.xlane.xlu1 %975  ;;  %v985_v62 = vpop.xlane.xlu0 %984 }
 0x348   : > { %1905 = vrsqrt.f32 %v1042_v58  ;;  %v1020_v2 = vmul.f32 0.03125, %v976_v0  ;;  %v1023_v5 = vmul.f32 0.03125, %v985_v62 }
 0x349   : > { %1907 = vrsqrt.f32 %v1035_v40 }
 0x34a   : > { %v1036_v8 = vadd.f32 1e-05, %v1020_v2  ;;  %v1039_v9 = vadd.f32 1e-05, %v1023_v5 }
 0x34b   : > { %v988_v10 = vpop.xlane.xlu1 %987  ;;  %v1003_v14 = vpop.xlane.xlu0 %1002 }
 0x34c   : > { %1909 = vrsqrt.f32 %v1036_v8  ;;  %v1024_v15 = vmul.f32 0.03125, %v988_v10  ;;  %v1029_v16 = vmul.f32 0.03125, %v1003_v14 }
 0x34d   : > { %v1900_v17 = vpop.eup %1899  ;;  %1911 = vrsqrt.f32 %v1039_v9 }
 0x34e   : > { %v1069_v19 = vmul.f32 %v1900_v17, %v2620_v31  ;;  %v1040_v20 = vadd.f32 1e-05, %v1024_v15  ;;  %v1045_v21 = vadd.f32 1e-05, %v1029_v16 }
 0x34f   : > { %v1006_v3 = vpop.xlane.xlu1 %1005  ;;  %v997_v45 = vpop.xlane.xlu0 %996 }
 0x350   : > { %v1092_v25 = vmul.f32 %v2717_v18, %v1069_v19  ;;  %1913 = vrsqrt.f32 %v1040_v20  ;;  %v1030_v36 = vmul.f32 0.03125, %v1006_v3  ;;  %v1027_v37 = vmul.f32 0.03125, %v997_v45 }
 0x351   : > { %v1902_v38 = vpop.eup %1901  ;;  %1915 = vrsqrt.f32 %v1045_v21 }
 0x352   : > { %v1904_v39 = vpop.eup %1903  ;;  %v2729_v31 = vadd.f32 %v2725_v11, %v1092_v25  ;;  %v1070_v44 = vmul.f32 %v1902_v38, %v2625_v48  ;;  %v1046_v50 = vadd.f32 1e-05, %v1030_v36  ;;  %v1043_v27 = vadd.f32 1e-05, %v1027_v37 }
 0x353   : > { %v1073_v26 = vmul.f32 %v1904_v39, %v2617_v30  ;;  %v1000_v53 = vpop.xlane.xlu1 %999  ;;  %v1009_v56 = vpop.xlane.xlu0 %1008 }
 0x354   : > { %1131 = vst.msk [vmem:[#allocation2 + $0x10] sm:$0xff] %vm544_vm2, %v2729_v31  ;;  %v1093_v57 = vmul.f32 %v2717_v18, %v1070_v44  ;;  %1917 = vrsqrt.f32 %v1046_v50  ;;  %v1028_v58 = vmul.f32 0.03125, %v1000_v53  ;;  %v1031_v40 = vmul.f32 0.03125, %v1009_v56 }
 0x355   : > { %v1906_v0 = vpop.eup %1905  ;;  %v1096_v62 = vmul.f32 %v2717_v18, %v1073_v26  ;;  %1919 = vrsqrt.f32 %v1043_v27 }
 0x356   : > { %v1908_v2 = vpop.eup %1907  ;;  %v2738_v48 = vadd.f32 %v2725_v11, %v1093_v57  ;;  %v1074_v30 = vmul.f32 %v1906_v0, %v2638_v61  ;;  %v1044_v5 = vadd.f32 1e-05, %v1028_v58  ;;  %v1047_v8 = vadd.f32 1e-05, %v1031_v40 }
 0x357   : > { %v2742_v9 = vadd.f32 %v2725_v11, %v1096_v62  ;;  %v1067_v10 = vmul.f32 %v1908_v2, %v2628_v49  ;;  %v1012_v14 = vpop.xlane.xlu1 %1011  ;;  %v1015_v15 = vpop.xlane.xlu0 %1014 }
 0x358   : > { %1132 = vst.msk [vmem:[#allocation2 + $0x18] sm:$0xff] %vm544_vm2, %v2738_v48  ;;  %v1097_v16 = vmul.f32 %v2717_v18, %v1074_v30  ;;  %1921 = vrsqrt.f32 %v1044_v5  ;;  %v1032_v17 = vmul.f32 0.03125, %v1012_v14  ;;  %v1033_v19 = vmul.f32 0.03125, %v1015_v15 }
 0x359   : > { %v1910_v20 = vpop.eup %1909  ;;  %1135 = vst.msk [vmem:[#allocation2 + $0x30] sm:$0xff] %vm544_vm2, %v2742_v9  ;;  %v1090_v61 = vmul.f32 %v2717_v18, %v1067_v10  ;;  %1923 = vrsqrt.f32 %v1047_v8 }
 0x35a   : > { %v1912_v21 = vpop.eup %1911  ;;  %v2752_v49 = vadd.f32 %v2725_v11, %v1097_v16  ;;  %v1068_v3 = vmul.f32 %v1910_v20, %v2652_v33  ;;  %v1048_v45 = vadd.f32 1e-05, %v1032_v17  ;;  %v1049_v25 = vadd.f32 1e-05, %v1033_v19 }
 0x35b   : > { %v2756_v36 = vadd.f32 %v2725_v11, %v1090_v61  ;;  %v1071_v37 = vmul.f32 %v1912_v21, %v2641_v32  ;;  %v1018_v38 = vpop.xlane.xlu1 %1017 }
 0x35c   : > { %1136 = vst.msk [vmem:[#allocation2 + $0x38] sm:$0xff] %vm544_vm2, %v2752_v49  ;;  %v1091_v39 = vmul.f32 %v2717_v18, %v1068_v3  ;;  %1925 = vrsqrt.f32 %v1048_v45  ;;  %v1034_v44 = vmul.f32 0.03125, %v1018_v38 }
 0x35d   : > { %v1914_v50 = vpop.eup %1913  ;;  %1129 = vst.msk [vmem:[#allocation2] sm:$0xff] %vm544_vm2, %v2756_v36  ;;  %v1094_v33 = vmul.f32 %v2717_v18, %v1071_v37  ;;  %1927 = vrsqrt.f32 %v1049_v25 }
 0x35e   : > { %v1916_v27 = vpop.eup %1915  ;;  %v2766_v26 = vadd.f32 %v2725_v11, %v1091_v39  ;;  %v1072_v32 = vmul.f32 %v1914_v50, %v2649_v41  ;;  %v1050_v53 = vadd.f32 1e-05, %v1034_v44 }
 0x35f   : > { %v2770_v56 = vadd.f32 %v2725_v11, %v1094_v33  ;;  %v1077_v57 = vmul.f32 %v1916_v27, %v2665_v24 }
 0x360   : > { %1130 = vst.msk [vmem:[#allocation2 + $0x8] sm:$0xff] %vm544_vm2, %v2766_v26  ;;  %v1095_v58 = vmul.f32 %v2717_v18, %v1072_v32  ;;  %1929 = vrsqrt.f32 %v1050_v53 }
 0x361   : > { %v1918_v40 = vpop.eup %1917  ;;  %1133 = vst.msk [vmem:[#allocation2 + $0x20] sm:$0xff] %vm544_vm2, %v2770_v56  ;;  %v1100_v0 = vmul.f32 %v2717_v18, %v1077_v57 }
 0x362   : > { %v1920_v62 = vpop.eup %1919  ;;  %v2780_v41 = vadd.f32 %v2725_v11, %v1095_v58  ;;  %v1078_v2 = vmul.f32 %v1918_v40, %v2662_v46 }
 0x363   : > { %v2784_v24 = vadd.f32 %v2725_v11, %v1100_v0  ;;  %v1075_v30 = vmul.f32 %v1920_v62, %v2676_v51 }
 0x364   : > { %1134 = vst.msk [vmem:[#allocation2 + $0x28] sm:$0xff] %vm544_vm2, %v2780_v41  ;;  %v1101_v5 = vmul.f32 %v2717_v18, %v1078_v2 }
 0x365   : > { %v1922_v8 = vpop.eup %1921  ;;  %1139 = vst.msk [vmem:[#allocation2 + $0x50] sm:$0xff] %vm544_vm2, %v2784_v24  ;;  %v1098_v10 = vmul.f32 %v2717_v18, %v1075_v30 }
 0x366   : > { %v1924_v14 = vpop.eup %1923  ;;  %v2794_v15 = vadd.f32 %v2725_v11, %v1101_v5  ;;  %v1076_v46 = vmul.f32 %v1922_v8, %v2673_v59 }
 0x367   : > { %v1121_v16 = vadd.f32 %v2725_v11, %v1098_v10  ;;  %v1079_v51 = vmul.f32 %v1924_v14, %v2689_v1 }
 0x368   : > { %1140 = vst.msk [vmem:[#allocation2 + $0x58] sm:$0xff] %vm544_vm2, %v2794_v15  ;;  %v1099_v17 = vmul.f32 %v2717_v18, %v1076_v46 }
 0x369   : > { %v1926_v19 = vpop.eup %1925  ;;  %1137 = vst.msk [vmem:[#allocation2 + $0x40] sm:$0xff] %vm544_vm2, %v1121_v16  ;;  %v1102_v20 = vmul.f32 %v2717_v18, %v1079_v51 }
 0x36a   : > { %v1928_v61 = vpop.eup %1927  ;;  %v1122_v21 = vadd.f32 %v2725_v11, %v1099_v17  ;;  %v1080_v3 = vmul.f32 %v1926_v19, %v2686_v54 }
 0x36b   : > { %v1125_v59 = vadd.f32 %v2725_v11, %v1102_v20  ;;  %v1081_v45 = vmul.f32 %v1928_v61, %v2700_v6 }
 0x36c   : > { %1138 = vst.msk [vmem:[#allocation2 + $0x48] sm:$0xff] %vm544_vm2, %v1122_v21  ;;  %v1103_v1 = vmul.f32 %v2717_v18, %v1080_v3 }
 0x36d   : > { %v1930_v25 = vpop.eup %1929  ;;  %1141 = vst.msk [vmem:[#allocation2 + $0x60] sm:$0xff] %vm544_vm2, %v1125_v59  ;;  %v1104_v37 = vmul.f32 %v2717_v18, %v1081_v45 }
 0x36e   : > { %v1126_v38 = vadd.f32 %v2725_v11, %v1103_v1  ;;  %v1082_v39 = vmul.f32 %v1930_v25, %v2697_v13 }
 0x36f   : > { %v1127_v44 = vadd.f32 %v2725_v11, %v1104_v37 }
 0x370   : > { %1142 = vst.msk [vmem:[#allocation2 + $0x68] sm:$0xff] %vm544_vm2, %v1126_v38  ;;  %v1105_v54 = vmul.f32 %v2717_v18, %v1082_v39  ;;  %1148 = sbr.rel (%p1664_p1) target bundleno = 1437 (0x59d), region = 64 }
 0x371   : > { %1143 = vst.msk [vmem:[#allocation2 + $0x70] sm:$0xff] %vm544_vm2, %v1127_v44 }
 0x372   : > { %v1128_v6 = vadd.f32 %v2725_v11, %v1105_v54 }
 0x374   : > { %1144 = vst.msk [vmem:[#allocation2 + $0x78] sm:$0xff] %vm544_vm2, %v1128_v6 }
 0x375   : > { %1149 = vst.msk [vmem:[%s3166_s9] sm:$0xff] %vm544_vm2, %v2453_v28  ;;  %1150 = vst.msk [vmem:[%s3166_s9 + $0x8] sm:$0xff] %vm544_vm2, %v2496_v43  ;;  %v1165_v28 = vpack.c.bf16 %v2766_v26, %v2756_v36  ;;  %v1171_v43 = vpack.c.bf16 %v1126_v38, %v1125_v59  ;;  %vm1317_vm3 = vcmask 31744  }
 0x376   : > { %1151 = vst.msk [vmem:[%s3166_s9 + $0x10] sm:$0xff] %vm544_vm2, %v2441_v22  ;;  %1152 = vst.msk [vmem:[%s3166_s9 + $0x18] sm:$0xff] %vm544_vm2, %v2471_v34  ;;  %v1931_v22 = vld [vmem:[%s3163_s6 + $0x8] sm:$0xff]   ;;  %v1166_v34 = vpack.c.bf16 %v2738_v48, %v2729_v31 }
 0x377   : > { %1153 = vst.msk [vmem:[%s3166_s9 + $0x20] sm:$0xff] %vm544_vm2, %v2456_v29  ;;  %1154 = vst.msk [vmem:[%s3166_s9 + $0x28] sm:$0xff] %vm544_vm2, %v2493_v42  ;;  %v1169_v29 = vpack.c.bf16 %v1122_v21, %v1121_v16  ;;  %1807 = vmatprep.subr.bf16.mxu0 %v1931_v22  ;;  %1843 = vmatprep.subr.bf16.mxu1 %v1931_v22  ;;  %v1167_v42 = vpack.c.bf16 %v2780_v41, %v2770_v56 }
 0x378   : > { %1155 = vst.msk [vmem:[%s3166_s9 + $0x30] sm:$0xff] %vm544_vm2, %v2444_v23  ;;  %1156 = vst.msk [vmem:[%s3166_s9 + $0x38] sm:$0xff] %vm544_vm2, %v2474_v35  ;;  %v1932_v23 = vld [vmem:[%s3163_s6] sm:$0xff]   ;;  %1808 = vmatpush3.bf16.msra.mxu0 %v1931_v22  ;;  %1845 = vmatpush3.bf16.msra.mxu1 %v1931_v22  ;;  %v1170_v35 = vpack.c.bf16 %v2794_v15, %v2784_v24 }
 0x379   : > { %1157 = vst.msk [vmem:[%s3166_s9 + $0x40] sm:$0xff] %vm544_vm2, %v2527_v52  ;;  %1158 = vst.msk [vmem:[%s3166_s9 + $0x48] sm:$0xff] %vm544_vm2, %v2549_v60  ;;  %1809 = vmatprep.subr.bf16.mxu0 %v1932_v23  ;;  %1844 = vmatprep.subr.bf16.mxu1 %v1932_v23  ;;  %v1172_v52 = vpack.c.bf16 %v1128_v6, %v1127_v44 }
 0x37a   : > { %1159 = vst.msk [vmem:[%s3166_s9 + $0x50] sm:$0xff] %vm544_vm2, %v2511_v47  ;;  %1160 = vst.msk [vmem:[%s3166_s9 + $0x58] sm:$0xff] %vm544_vm2, %v2536_v55  ;;  %1811 = vmatprep.mubr.msk.bf16.mxu0 %vm544_vm2, %v1165_v28  ;;  %1819 = vmatprep.mubr.msk.bf16.mxu1 %vm544_vm2, %v1169_v29  ;;  %v1168_v47 = vpack.c.bf16 %v2752_v49, %v2742_v9  ;;  %v1665_v55 = vld [vmem:[%s3164_s7] ss:$0 sm:$0xff] }
 0x37b   : > { %1161 = vst.msk [vmem:[%s3166_s9 + $0x60] sm:$0xff] %vm544_vm2, %v2571_v4  ;;  %1162 = vst.msk [vmem:[%s3166_s9 + $0x68] sm:$0xff] %vm544_vm2, %v2593_v12 }
 0x37c   : > { %1163 = vst.msk [vmem:[%s3166_s9 + $0x70] sm:$0xff] %vm544_vm2, %v2558_v63  ;;  %1164 = vst.msk [vmem:[%s3166_s9 + $0x78] sm:$0xff] %vm544_vm2, %v2580_v7  ;;  %1810 = vmatpush3.bf16.msra.mxu0 %v1932_v23  ;;  %1846 = vmatpush3.bf16.msra.mxu1 %v1932_v23 }
 0x37f   : > { %1812 = vmatmul.mubr.msk.bf16.vlgmr.msra.gmra.mxu0 %vm544_vm2, %v1166_v34  ;;  %1820 = vmatmul.mubr.msk.bf16.vlgmr.msra.gmra.mxu1 %vm544_vm2, %v1170_v35 }
 0x380   : > { %1815 = vmatprep.mubr.msk.bf16.mxu0 %vm544_vm2, %v1167_v42  ;;  %1823 = vmatprep.mubr.msk.bf16.mxu1 %vm544_vm2, %v1171_v43 }
 0x387   : > { %1816 = vmatmul.mubr.msk.bf16.gmra.mxu0 %vm544_vm2, %v1168_v47  ;;  %1824 = vmatmul.mubr.msk.bf16.gmra.mxu1 %vm544_vm2, %v1172_v52 }
 0x43f   : > { %v1813_v60 = vpop.f32.mrf.mxu0  ;;  %v1821_v63 = vpop.f32.mrf.mxu1 }
 0x440   : > { %v2928_v4 = vadd.f32 %v1813_v60, %v1665_v55  ;;  %v2930_v7 = vadd.f32 %v1821_v63, %v1665_v55 }
 0x441   : > { %v1254_v12 = vpop.f32.mrf.mxu0  ;;  %v1286_v13 = vpop.f32.mrf.mxu1 }
 0x442   : > { %v2932_v18 = vadd.f32 %v1665_v55, %v1254_v12  ;;  %v1348_v11 = vsel %vm1317_vm3, %v2930_v7, -inf  ;;  %v1324_v31 = vsel %vm1317_vm3, %v2928_v4, -inf  ;;  %v2938_v33 = vadd.f32 %v1665_v55, %v1286_v13 }
 0x443   : > { %1349 = vmax.xlane.f32.xlu0 %v1348_v11  ;;  %v1822_v48 = vpop.f32.mrf.mxu1  ;;  %1325 = vmax.xlane.f32.xlu1 %v1324_v31  ;;  %v1814_v9 = vpop.f32.mrf.mxu0 }
 0x444   : > { %v1266_v49 = vadd.f32 %v1814_v9, %v1665_v55  ;;  %v2940_v27 = vadd.f32 %v1822_v48, %v1665_v55  ;;  %v1318_v32 = vsel %vm1317_vm3, %v2932_v18, -inf  ;;  %v1342_v62 = vsel %vm1317_vm3, %v2938_v33, -inf }
 0x445   : > { %v1257_v36 = vpop.f32.mrf.mxu0  ;;  %v1289_v50 = vpop.f32.mrf.mxu1 }
 0x446   : > { %v1327_v26 = vsel %vm1317_vm3, %v1266_v49, -inf  ;;  %v2945_v58 = vadd.f32 %v1665_v55, %v1257_v36  ;;  %v2947_v40 = vadd.f32 %v1665_v55, %v1289_v50  ;;  %v1351_v0 = vsel %vm1317_vm3, %v2940_v27, -inf }
 0x447   : > { %1328 = vmax.xlane.f32.xlu1 %v1327_v26  ;;  %1319 = vmax.xlane.f32.xlu0 %v1318_v32  ;;  %v1817_v53 = vpop.f32.mrf.mxu0  ;;  %v1825_v56 = vpop.f32.mrf.mxu1 }
 0x448   : > { %v2953_v24 = vadd.f32 %v1817_v53, %v1665_v55  ;;  %v1345_v5 = vsel %vm1317_vm3, %v2947_v40, -inf  ;;  %v1321_v8 = vsel %vm1317_vm3, %v2945_v58, -inf  ;;  %v2974_v3 = vadd.f32 %v1825_v56, %v1665_v55 }
 0x449   : > { %v1270_v57 = vpop.f32.mrf.mxu0  ;;  %v1302_v2 = vpop.f32.mrf.mxu1 }
 0x44a   : > { %v1336_v46 = vsel %vm1317_vm3, %v2953_v24, -inf  ;;  %v2962_v16 = vadd.f32 %v1665_v55, %v1270_v57  ;;  %v2966_v19 = vadd.f32 %v1665_v55, %v1302_v2  ;;  %v1360_v37 = vsel %vm1317_vm3, %v2974_v3, -inf }
 0x44b   : > { %1352 = vmax.xlane.f32.xlu1 %v1351_v0  ;;  %1343 = vmax.xlane.f32.xlu0 %v1342_v62  ;;  %v1818_v41 = vpop.f32.mrf.mxu0  ;;  %v1826_v14 = vpop.f32.mrf.mxu1 }
 0x44c   : > { %v1282_v30 = vadd.f32 %v1818_v41, %v1665_v55  ;;  %v1330_v21 = vsel %vm1317_vm3, %v2962_v16, -inf  ;;  %v2976_v59 = vadd.f32 %v1826_v14, %v1665_v55  ;;  %v1354_v1 = vsel %vm1317_vm3, %v2966_v19, -inf }
 0x44d   : > { %v1273_v10 = vpop.f32.mrf.mxu0  ;;  %v1305_v17 = vpop.f32.mrf.mxu1 }
 0x44e   : > { %v1339_v15 = vsel %vm1317_vm3, %v1282_v30, -inf  ;;  %v2964_v51 = vadd.f32 %v1665_v55, %v1273_v10  ;;  %v2968_v20 = vadd.f32 %v1665_v55, %v1305_v17  ;;  %v1363_v25 = vsel %vm1317_vm3, %v2976_v59, -inf }
 0x44f   : > { %1346 = vmax.xlane.f32.xlu1 %v1345_v5  ;;  %1322 = vmax.xlane.f32.xlu0 %v1321_v8 }
 0x450   : > { %v1333_v61 = vsel %vm1317_vm3, %v2964_v51, -inf  ;;  %v1357_v45 = vsel %vm1317_vm3, %v2968_v20, -inf }
 0x453   : > { %1340 = vmax.xlane.f32.xlu1 %v1339_v15  ;;  %1337 = vmax.xlane.f32.xlu0 %v1336_v46 }
 0x457   : > { %1334 = vmax.xlane.f32.xlu1 %v1333_v61  ;;  %1331 = vmax.xlane.f32.xlu0 %v1330_v21 }
 0x45b   : > { %1358 = vmax.xlane.f32.xlu1 %v1357_v45  ;;  %1355 = vmax.xlane.f32.xlu0 %v1354_v1 }
 0x45f   : > { %1364 = vmax.xlane.f32.xlu1 %v1363_v25  ;;  %1361 = vmax.xlane.f32.xlu0 %v1360_v37 }
 0x4cc   : > { %v1350_v38 = vpop.xlane.xlu0 %1349  ;;  %v1326_v39 = vpop.xlane.xlu1 %1325 }
 0x4cd   : > { %v2987_v44 = vsub.f32 %v2930_v7, %v1350_v38  ;;  %v2990_v54 = vsub.f32 %v2928_v4, %v1326_v39 }
 0x4cf   : > { %v1386_v6 = vmul.f32 1.442695, %v2990_v54  ;;  %v1402_v22 = vmul.f32 1.442695, %v2987_v44 }
 0x4d0   : > { %v1329_v23 = vpop.xlane.xlu1 %1328  ;;  %v1320_v28 = vpop.xlane.xlu0 %1319 }
 0x4d1   : > { %v2994_v29 = vsub.f32 %v1266_v49, %v1329_v23  ;;  %v2997_v34 = vsub.f32 %v2932_v18, %v1320_v28  ;;  %1933 = vpow2.f32 %v1386_v6 }
 0x4d2   : > { %1935 = vpow2.f32 %v1402_v22 }
 0x4d3   : > { %v1388_v35 = vmul.f32 1.442695, %v2994_v29  ;;  %v1382_v42 = vmul.f32 1.442695, %v2997_v34 }
 0x4d4   : > { %v1353_v43 = vpop.xlane.xlu1 %1352  ;;  %v1344_v47 = vpop.xlane.xlu0 %1343 }
 0x4d5   : > { %1937 = vpow2.f32 %v1388_v35  ;;  %v3002_v52 = vsub.f32 %v2940_v27, %v1353_v43  ;;  %v3005_v55 = vsub.f32 %v2938_v33, %v1344_v47 }
 0x4d6   : > { %1939 = vpow2.f32 %v1382_v42 }
 0x4d7   : > { %v1404_v60 = vmul.f32 1.442695, %v3002_v52  ;;  %v1398_v63 = vmul.f32 1.442695, %v3005_v55 }
 0x4d8   : > { %v1347_v4 = vpop.xlane.xlu1 %1346  ;;  %v1323_v7 = vpop.xlane.xlu0 %1322 }
 0x4d9   : > { %1941 = vpow2.f32 %v1404_v60  ;;  %v3010_v12 = vsub.f32 %v2947_v40, %v1347_v4  ;;  %v3013_v13 = vsub.f32 %v2945_v58, %v1323_v7 }
 0x4da   : > { %1943 = vpow2.f32 %v1398_v63 }
 0x4db   : > { %v1384_v18 = vmul.f32 1.442695, %v3013_v13  ;;  %v1400_v11 = vmul.f32 1.442695, %v3010_v12 }
 0x4dc   : > { %v1341_v31 = vpop.xlane.xlu1 %1340  ;;  %v1338_v48 = vpop.xlane.xlu0 %1337 }
 0x4dd   : > { %v3017_v9 = vsub.f32 %v1282_v30, %v1341_v31  ;;  %v3020_v49 = vsub.f32 %v2953_v24, %v1338_v48  ;;  %1945 = vpow2.f32 %v1384_v18 }
 0x4de   : > { %v1934_v36 = vpop.eup %1933  ;;  %1947 = vpow2.f32 %v1400_v11 }
 0x4df   : > { %v1394_v50 = vmul.f32 1.442695, %v3020_v49  ;;  %v1396_v33 = vmul.f32 1.442695, %v3017_v9  ;;  %v1420_v26 = vsel %vm1317_vm3, %v1934_v36, 0.0  ;;  %v1936_v53 = vpop.eup %1935 }
 0x4e0   : > { %v1335_v27 = vpop.xlane.xlu1 %1334  ;;  %v1332_v32 = vpop.xlane.xlu0 %1331  ;;  %1421 = vadd.xlane.f32.xlu0 %v1420_v26  ;;  %v1444_v2 = vsel %vm1317_vm3, %v1936_v53, 0.0 }
 0x4e1   : > { %v3026_v56 = vsub.f32 %v2964_v51, %v1335_v27  ;;  %v3029_v57 = vsub.f32 %v2962_v16, %v1332_v32  ;;  %1949 = vpow2.f32 %v1394_v50 }
 0x4e2   : > { %v1938_v58 = vpop.eup %1937  ;;  %1951 = vpow2.f32 %v1396_v33 }
 0x4e3   : > { %v1390_v40 = vmul.f32 1.442695, %v3029_v57  ;;  %v1423_v0 = vsel %vm1317_vm3, %v1938_v58, 0.0  ;;  %v1392_v62 = vmul.f32 1.442695, %v3026_v56  ;;  %v1940_v30 = vpop.eup %1939 }
 0x4e4   : > { %1424 = vadd.xlane.f32.xlu1 %v1423_v0  ;;  %v1359_v41 = vpop.xlane.xlu1 %1358  ;;  %v1356_v24 = vpop.xlane.xlu0 %1355  ;;  %1445 = vadd.xlane.f32.xlu0 %v1444_v2  ;;  %v1414_v51 = vsel %vm1317_vm3, %v1940_v30, 0.0 }
 0x4e5   : > { %v3036_v5 = vsub.f32 %v2968_v20, %v1359_v41  ;;  %v3039_v8 = vsub.f32 %v2966_v19, %v1356_v24  ;;  %1953 = vpow2.f32 %v1390_v40 }
 0x4e6   : > { %v1942_v10 = vpop.eup %1941  ;;  %1955 = vpow2.f32 %v1392_v62 }
 0x4e7   : > { %v1406_v14 = vmul.f32 1.442695, %v3039_v8  ;;  %v1447_v15 = vsel %vm1317_vm3, %v1942_v10, 0.0  ;;  %v1408_v46 = vmul.f32 1.442695, %v3036_v5  ;;  %v1944_v20 = vpop.eup %1943 }
 0x4e8   : > { %1448 = vadd.xlane.f32.xlu1 %v1447_v15  ;;  %v1365_v16 = vpop.xlane.xlu1 %1364  ;;  %v1362_v17 = vpop.xlane.xlu0 %1361  ;;  %1415 = vadd.xlane.f32.xlu0 %v1414_v51  ;;  %v1438_v25 = vsel %vm1317_vm3, %v1944_v20, 0.0 }
 0x4e9   : > { %v3046_v61 = vsub.f32 %v2976_v59, %v1365_v16  ;;  %v3049_v19 = vsub.f32 %v2974_v3, %v1362_v17  ;;  %1957 = vpow2.f32 %v1406_v14 }
 0x4ea   : > { %v1946_v21 = vpop.eup %1945  ;;  %1959 = vpow2.f32 %v1408_v46 }
 0x4eb   : > { %v1410_v45 = vmul.f32 1.442695, %v3049_v19  ;;  %v1412_v1 = vmul.f32 1.442695, %v3046_v61  ;;  %v1417_v37 = vsel %vm1317_vm3, %v1946_v21, 0.0  ;;  %v1948_v38 = vpop.eup %1947 }
 0x4ec   : > { %1439 = vadd.xlane.f32.xlu0 %v1438_v25  ;;  %1418 = vadd.xlane.f32.xlu1 %v1417_v37  ;;  %v1441_v3 = vsel %vm1317_vm3, %v1948_v38, 0.0 }
 0x4ed   : > { %1961 = vpow2.f32 %v1410_v45 }
 0x4ee   : > { %v1950_v59 = vpop.eup %1949  ;;  %1963 = vpow2.f32 %v1412_v1 }
 0x4ef   : > { %v1432_v39 = vsel %vm1317_vm3, %v1950_v59, 0.0  ;;  %v1952_v6 = vpop.eup %1951 }
 0x4f0   : > { %1442 = vadd.xlane.f32.xlu1 %v1441_v3  ;;  %1433 = vadd.xlane.f32.xlu0 %v1432_v39  ;;  %v1435_v23 = vsel %vm1317_vm3, %v1952_v6, 0.0 }
 0x4f2   : > { %v1954_v22 = vpop.eup %1953 }
 0x4f3   : > { %v1426_v28 = vsel %vm1317_vm3, %v1954_v22, 0.0  ;;  %v1956_v35 = vpop.eup %1955 }
 0x4f4   : > { %1436 = vadd.xlane.f32.xlu1 %v1435_v23  ;;  %1427 = vadd.xlane.f32.xlu0 %v1426_v28  ;;  %v1429_v43 = vsel %vm1317_vm3, %v1956_v35, 0.0 }
 0x4f6   : > { %v1958_v42 = vpop.eup %1957 }
 0x4f7   : > { %v1450_v47 = vsel %vm1317_vm3, %v1958_v42, 0.0  ;;  %v1960_v60 = vpop.eup %1959 }
 0x4f8   : > { %1430 = vadd.xlane.f32.xlu1 %v1429_v43  ;;  %1451 = vadd.xlane.f32.xlu0 %v1450_v47  ;;  %v1453_v4 = vsel %vm1317_vm3, %v1960_v60, 0.0 }
 0x4fa   : > { %v1962_v63 = vpop.eup %1961 }
 0x4fb   : > { %v1456_v7 = vsel %vm1317_vm3, %v1962_v63, 0.0  ;;  %v1964_v18 = vpop.eup %1963 }
 0x4fc   : > { %1454 = vadd.xlane.f32.xlu1 %v1453_v4  ;;  %1457 = vadd.xlane.f32.xlu0 %v1456_v7  ;;  %v1459_v11 = vsel %vm1317_vm3, %v1964_v18, 0.0 }
 0x500   : > { %1460 = vadd.xlane.f32.xlu1 %v1459_v11 }
 0x569   : > { %v1422_v31 = vpop.xlane.xlu0 %1421 }
 0x56a   : > { %1965 = vlog2.f32 %v1422_v31 }
 0x56d   : > { %v1425_v48 = vpop.xlane.xlu1 %1424  ;;  %v1446_v36 = vpop.xlane.xlu0 %1445 }
 0x56e   : > { %1967 = vlog2.f32 %v1425_v48 }
 0x56f   : > { %1969 = vlog2.f32 %v1446_v36 }
 0x571   : > { %v1449_v50 = vpop.xlane.xlu1 %1448  ;;  %v1416_v33 = vpop.xlane.xlu0 %1415 }
 0x572   : > { %1971 = vlog2.f32 %v1449_v50 }
 0x573   : > { %1973 = vlog2.f32 %v1416_v33 }
 0x575   : > { %v1419_v27 = vpop.xlane.xlu1 %1418  ;;  %v1440_v26 = vpop.xlane.xlu0 %1439 }
 0x576   : > { %1975 = vlog2.f32 %v1419_v27 }
 0x577   : > { %v1966_v32 = vpop.eup %1965  ;;  %1977 = vlog2.f32 %v1440_v26 }
 0x578   : > { %v1467_v53 = vmul.f32 0.6931472, %v1966_v32 }
 0x579   : > { %v1443_v58 = vpop.xlane.xlu1 %1442  ;;  %v1434_v40 = vpop.xlane.xlu0 %1433 }
 0x57a   : > { %v1496_v62 = vsub.f32 %v2990_v54, %v1467_v53  ;;  %1979 = vlog2.f32 %v1443_v58 }
 0x57b   : > { %v1968_v0 = vpop.eup %1967  ;;  %1981 = vlog2.f32 %v1434_v40 }
 0x57c   : > { %v1970_v41 = vpop.eup %1969  ;;  %v1469_v2 = vmul.f32 0.6931472, %v1968_v0  ;;  %1512 = vst.msk [vmem:[%s3167_s10 + $0x10] sm:$0xff] %vm1317_vm3, %v1496_v62 }
 0x57d   : > { %v1483_v24 = vmul.f32 0.6931472, %v1970_v41  ;;  %v1437_v10 = vpop.xlane.xlu1 %1436  ;;  %v1428_v14 = vpop.xlane.xlu0 %1427 }
 0x57e   : > { %v1497_v30 = vsub.f32 %v2994_v29, %v1469_v2  ;;  %1983 = vlog2.f32 %v1437_v10 }
 0x57f   : > { %v1972_v15 = vpop.eup %1971  ;;  %v1504_v46 = vsub.f32 %v2987_v44, %v1483_v24  ;;  %1985 = vlog2.f32 %v1428_v14 }
 0x580   : > { %v1974_v16 = vpop.eup %1973  ;;  %1513 = vst.msk [vmem:[%s3167_s10 + $0x18] sm:$0xff] %vm1317_vm3, %v1497_v30  ;;  %v1485_v54 = vmul.f32 0.6931472, %v1972_v15 }
 0x581   : > { %1520 = vst.msk [vmem:[%s3167_s10 + $0x50] sm:$0xff] %vm1317_vm3, %v1504_v46  ;;  %v1463_v29 = vmul.f32 0.6931472, %v1974_v16  ;;  %v1431_v17 = vpop.xlane.xlu1 %1430  ;;  %v1452_v20 = vpop.xlane.xlu0 %1451 }
 0x582   : > { %v1505_v51 = vsub.f32 %v3002_v52, %v1485_v54  ;;  %1987 = vlog2.f32 %v1431_v17 }
 0x583   : > { %v1494_v44 = vsub.f32 %v2997_v34, %v1463_v29  ;;  %v1976_v21 = vpop.eup %1975  ;;  %1989 = vlog2.f32 %v1452_v20 }
 0x584   : > { %1521 = vst.msk [vmem:[%s3167_s10 + $0x58] sm:$0xff] %vm1317_vm3, %v1505_v51  ;;  %v1978_v45 = vpop.eup %1977  ;;  %v1465_v1 = vmul.f32 0.6931472, %v1976_v21 }
 0x585   : > { %1510 = vst.msk [vmem:[%s3167_s10] sm:$0xff] %vm1317_vm3, %v1494_v44  ;;  %v1479_v52 = vmul.f32 0.6931472, %v1978_v45  ;;  %v1455_v25 = vpop.xlane.xlu1 %1454  ;;  %v1458_v37 = vpop.xlane.xlu0 %1457 }
 0x586   : > { %v1495_v34 = vsub.f32 %v3013_v13, %v1465_v1  ;;  %1991 = vlog2.f32 %v1455_v25 }
 0x587   : > { %v1980_v38 = vpop.eup %1979  ;;  %v1502_v59 = vsub.f32 %v3005_v55, %v1479_v52  ;;  %1993 = vlog2.f32 %v1458_v37 }
 0x588   : > { %v1982_v3 = vpop.eup %1981  ;;  %1511 = vst.msk [vmem:[%s3167_s10 + $0x8] sm:$0xff] %vm1317_vm3, %v1495_v34  ;;  %v1481_v39 = vmul.f32 0.6931472, %v1980_v38 }
 0x589   : > { %1518 = vst.msk [vmem:[%s3167_s10 + $0x40] sm:$0xff] %vm1317_vm3, %v1502_v59  ;;  %v1475_v6 = vmul.f32 0.6931472, %v1982_v3  ;;  %v1461_v22 = vpop.xlane.xlu1 %1460 }
 0x58a   : > { %v1503_v13 = vsub.f32 %v3010_v12, %v1481_v39  ;;  %1995 = vlog2.f32 %v1461_v22 }
 0x58b   : > { %v1984_v23 = vpop.eup %1983  ;;  %v1500_v55 = vsub.f32 %v3020_v49, %v1475_v6 }
 0x58c   : > { %v1986_v28 = vpop.eup %1985  ;;  %1519 = vst.msk [vmem:[%s3167_s10 + $0x48] sm:$0xff] %vm1317_vm3, %v1503_v13  ;;  %v1477_v35 = vmul.f32 0.6931472, %v1984_v23 }
 0x58d   : > { %1516 = vst.msk [vmem:[%s3167_s10 + $0x30] sm:$0xff] %vm1317_vm3, %v1500_v55  ;;  %v1471_v42 = vmul.f32 0.6931472, %v1986_v28 }
 0x58e   : > { %v1501_v43 = vsub.f32 %v3017_v9, %v1477_v35 }
 0x58f   : > { %v1988_v12 = vpop.eup %1987  ;;  %v1498_v47 = vsub.f32 %v3029_v57, %v1471_v42 }
 0x590   : > { %v1990_v60 = vpop.eup %1989  ;;  %1517 = vst.msk [vmem:[%s3167_s10 + $0x38] sm:$0xff] %vm1317_vm3, %v1501_v43  ;;  %v1473_v49 = vmul.f32 0.6931472, %v1988_v12 }
 0x591   : > { %1514 = vst.msk [vmem:[%s3167_s10 + $0x20] sm:$0xff] %vm1317_vm3, %v1498_v47  ;;  %v1487_v63 = vmul.f32 0.6931472, %v1990_v60 }
 0x592   : > { %v1499_v4 = vsub.f32 %v3026_v56, %v1473_v49 }
 0x593   : > { %v1992_v7 = vpop.eup %1991  ;;  %v1506_v9 = vsub.f32 %v3039_v8, %v1487_v63 }
 0x594   : > { %v1994_v18 = vpop.eup %1993  ;;  %1515 = vst.msk [vmem:[%s3167_s10 + $0x28] sm:$0xff] %vm1317_vm3, %v1499_v4  ;;  %v1489_v57 = vmul.f32 0.6931472, %v1992_v7 }
 0x595   : > { %1522 = vst.msk [vmem:[%s3167_s10 + $0x60] sm:$0xff] %vm1317_vm3, %v1506_v9  ;;  %v1491_v11 = vmul.f32 0.6931472, %v1994_v18 }
 0x596   : > { %v1507_v31 = vsub.f32 %v3036_v5, %v1489_v57 }
 0x597   : > { %v1996_v48 = vpop.eup %1995  ;;  %v1508_v56 = vsub.f32 %v3049_v19, %v1491_v11 }
 0x598   : > { %1523 = vst.msk [vmem:[%s3167_s10 + $0x68] sm:$0xff] %vm1317_vm3, %v1507_v31  ;;  %v1493_v8 = vmul.f32 0.6931472, %v1996_v48 }
 0x599   : > { %1524 = vst.msk [vmem:[%s3167_s10 + $0x70] sm:$0xff] %vm1317_vm3, %v1508_v56 }
 0x59a   : > { %v1509_v36 = vsub.f32 %v3046_v61, %v1493_v8 }
 0x59c   : > { %1525 = vst.msk [vmem:[%s3167_s10 + $0x78] sm:$0xff] %vm1317_vm3, %v1509_v36 }
 0x59d PF: > { %p21_p2 = scmp.ge.s32.totalorder %s2142_s18, 5   ;;  %s3176_s13 = smov %s2051_s14 }
 0x59e   : > { %s3177_s14 = smov %s2055_s15  ;;  %s3178_s15 = smov %s2152_s21 }
 0x59f   : > { %s3179_s16 = smov %s2142_s18  ;;  %23 = sbr.rel (!%p21_p2) target bundleno = 3 (0x3), region = 125 }
 0x5a4   :  { %1559 = vsyncpa [#allocation4], 1 }
 0x5a5   :  { %1561 = vsyncpa [#allocation4 + $0x1], 1 }

</bundles_post_ra>
